<compile_context>
chip_gen: v7x
topology: tpu7x:2x2x1
jax: 0.10.0
libtpu: 0.0.40
codegen_flags: <defaults>
</compile_context>

<pallas_src>
import math

import jax
import jax.numpy as jnp
from jax.experimental import pallas as pl
from jax.experimental.pallas import tpu as pltpu


# Logical dims (PyTorch module) and lane-padded dims used inside the kernel.
D_IN = 26
H1, H2, D_OUT = 400, 300, 5
D_IN_P, H1P, H2P, D_OUT_P = 128, 512, 384, 128   # zero-padded to lane multiples


def _mlp_kernel(x_ref, w1_ref, b1_ref, w2_ref, b2_ref, w3_ref, b3_ref, o_ref):
    # Layer 1: Linear(128-padded -> 512-padded) + ReLU.
    # x is already lane-dense bf16; bf16 MXU operands, f32 accumulation.
    h1 = jnp.dot(x_ref[...], w1_ref[...],
                 preferred_element_type=jnp.float32) + b1_ref[...]
    h1 = jnp.maximum(h1, 0.0).astype(jnp.bfloat16)   # bf16 intermediate

    # Layer 2: Linear(512 -> 384-padded) + ReLU.
    h2 = jnp.dot(h1, w2_ref[...],
                 preferred_element_type=jnp.float32) + b2_ref[...]
    h2 = jnp.maximum(h2, 0.0).astype(jnp.bfloat16)   # bf16 intermediate

    # Layer 3: Linear(384 -> 128-padded) + Tanh.  Lane-dense (TM, 128) bf16 store.
    h3 = jnp.dot(h2, w3_ref[...],
                 preferred_element_type=jnp.float32) + b3_ref[...]
    o_ref[...] = jnp.tanh(h3).astype(o_ref.dtype)


def _round_up(x, m):
    return ((x + m - 1) // m) * m


def _choose_tm(B, tm_max=512):
    """Batch tile: <= tm_max, multiple of 16 rows (bf16 sublane pairs), and
    sized ~ceil(B/2) so the grid has >=2 steps whenever the batch allows it
    (keeps both v7x TensorCores busy while amortizing per-step overhead)."""
    if B <= 16:
        return 16
    return min(tm_max, _round_up((B + 1) // 2, 16))


def net_forward(x, params, *, tm_max=512):
    """Fused MLP forward. x: (B, 26) f32 -> (B, 5) f32."""
    w1, b1, w2, b2, w3, b3 = params
    B = x.shape[0]

    tm = _choose_tm(B, tm_max)
    b_pad = _round_up(B, tm)          # whole tiles only -> no ragged blocks
    grid = (b_pad // tm,)

    # Lane-dense bf16 input: pad features 26 -> 128 and batch to a tile
    # multiple. Padded rows/cols are zero and never contaminate results.
    x_p = (jnp.zeros((b_pad, D_IN_P), jnp.bfloat16)
           .at[:B, :D_IN].set(x.astype(jnp.bfloat16)))

    # Weights/biases: full block, constant index_map -> DMA'd once, resident
    # in VMEM across all grid steps.
    def resident(a):
        return pl.BlockSpec(a.shape, lambda i: (0,) * a.ndim)

    out_padded = pl.pallas_call(
        _mlp_kernel,
        out_shape=jax.ShapeDtypeStruct((b_pad, D_OUT_P), jnp.bfloat16),
        grid=grid,
        in_specs=[
            pl.BlockSpec((tm, D_IN_P), lambda i: (i, 0)),   # x tiles (pipelined)
            resident(w1), resident(b1),
            resident(w2), resident(b2),
            resident(w3), resident(b3),
        ],
        out_specs=pl.BlockSpec((tm, D_OUT_P), lambda i: (i, 0)),
        compiler_params=pltpu.CompilerParams(
            dimension_semantics=("parallel",),   # batch axis -> 2 TCs on v7x
        ),
    )(x_p, w1, b1, w2, b2, w3, b3)

    # Padded output columns are exactly tanh(0 + 0) terms sliced away; padded
    # rows are dropped.  Cast back to f32 to match the module's signature.
    # TODO(synk): in a serving loop, fuse this slice into the consumer (or keep
    # the padded bf16 block) and prefetch/pin weights across calls (P10);
    # single-buffering the resident weight specs is a further minor VMEM saving.
    return out_padded[:B, :D_OUT].astype(jnp.float32)


def init_params(key):
    """PyTorch-nn.Linear-style init (uniform +-1/sqrt(fan_in)), zero-padded to
    lane-aligned shapes. Weights stored (in, out) in bf16; biases (1, out) f32.
    Padded regions are explicitly zero so they never contaminate contractions.
    """
    # (logical_fan_in, logical_fan_out, padded_in, padded_out)
    dims = [(D_IN, H1, D_IN_P, H1P), (H1, H2, H1P, H2P), (H2, D_OUT, H2P, D_OUT_P)]
    params = []
    for fan_in, fan_out, kin_p, nout_p in dims:
        key, kw, kb = jax.random.split(key, 3)
        bound = 1.0 / math.sqrt(fan_in)
        w = jax.random.uniform(kw, (fan_in, fan_out), jnp.float32, -bound, bound)
        b = jax.random.uniform(kb, (1, fan_out), jnp.float32, -bound, bound)
        w_p = (jnp.zeros((kin_p, nout_p), jnp.float32)
               .at[:fan_in, :fan_out].set(w)).astype(jnp.bfloat16)
        b_p = jnp.zeros((1, nout_p), jnp.float32).at[:, :fan_out].set(b)
        params += [w_p, b_p]
    return tuple(params)


def _reference(x, params):
    """Plain-JAX reference doing the identical bf16-operand / f32-accum math."""
    w1, b1, w2, b2, w3, b3 = params
    B = x.shape[0]
    xb = (jnp.zeros((B, D_IN_P), jnp.bfloat16)
          .at[:, :D_IN].set(x.astype(jnp.bfloat16)))
    h1 = jnp.maximum(
        jnp.dot(xb, w1, preferred_element_type=jnp.float32) + b1, 0.0
    ).astype(jnp.bfloat16)
    h2 = jnp.maximum(
        jnp.dot(h1, w2, preferred_element_type=jnp.float32) + b2, 0.0
    ).astype(jnp.bfloat16)
    h3 = jnp.dot(h2, w3, preferred_element_type=jnp.float32) + b3
    return jnp.tanh(h3).astype(jnp.bfloat16)[:, :D_OUT].astype(jnp.float32)


if __name__ == "__main__":
    key = jax.random.PRNGKey(0)
    key, kx = jax.random.split(key)
    params = init_params(key)

    fwd = jax.jit(lambda xx: net_forward(xx, params))

    # B=256: two full 128-row tiles (exercises the pipelined/parallel batch
    # axis).  B=200: ragged batch -> padded to whole tiles inside the wrapper.
    for B in (256, 200):
        x = jax.random.normal(jax.random.fold_in(kx, B), (B, D_IN), jnp.float32)
        out = jax.block_until_ready(fwd(x))
        ref = _reference(x, params)
        assert out.shape == (B, D_OUT), out.shape
        err = float(jnp.max(jnp.abs(out - ref)))
        assert err < 2e-2, f"B={B}: mismatch vs reference, max abs err = {err}"

    print("KERNEL_OK")
</pallas_src>

<mosaic_0001>
module attributes {stable_mosaic.version = 11 : i64} {
  func.func @_mlp_kernel(%arg0: i32, %arg1: memref<128x128xbf16, #tpu.memory_space<vmem>>, %arg2: memref<128x512xbf16, #tpu.memory_space<vmem>>, %arg3: memref<1x512xf32, #tpu.memory_space<vmem>>, %arg4: memref<512x384xbf16, #tpu.memory_space<vmem>>, %arg5: memref<1x384xf32, #tpu.memory_space<vmem>>, %arg6: memref<384x128xbf16, #tpu.memory_space<vmem>>, %arg7: memref<1x128xf32, #tpu.memory_space<vmem>>, %arg8: memref<128x128xbf16, #tpu.memory_space<vmem>>) attributes {dimension_semantics = [#tpu.dimension_semantics<parallel>], iteration_bounds = array<i64: 2>, scalar_prefetch = 0 : i64, scratch_operands = 0 : i64, tpu.core_type = #tpu.core_type<tc>, window_params = [{transform_indices = @transform_0, window_bounds = array<i64: 128, 128>}, {pipeline_mode = #tpu.pipeline_mode<synchronous>, transform_indices = @transform_1, window_bounds = array<i64: 128, 512>}, {pipeline_mode = #tpu.pipeline_mode<synchronous>, transform_indices = @transform_2, window_bounds = array<i64: 1, 512>}, {pipeline_mode = #tpu.pipeline_mode<synchronous>, transform_indices = @transform_3, window_bounds = array<i64: 512, 384>}, {pipeline_mode = #tpu.pipeline_mode<synchronous>, transform_indices = @transform_4, window_bounds = array<i64: 1, 384>}, {pipeline_mode = #tpu.pipeline_mode<synchronous>, transform_indices = @transform_5, window_bounds = array<i64: 384, 128>}, {pipeline_mode = #tpu.pipeline_mode<synchronous>, transform_indices = @transform_6, window_bounds = array<i64: 1, 128>}, {transform_indices = @transform_7, window_bounds = array<i64: 128, 128>}]} {
    %c0 = arith.constant 0 : index
    %c0_0 = arith.constant 0 : index
    %0 = vector.load %arg1[%c0, %c0_0] : memref<128x128xbf16, #tpu.memory_space<vmem>>, vector<128x128xbf16>
    %c0_1 = arith.constant 0 : index
    %c0_2 = arith.constant 0 : index
    %1 = vector.load %arg2[%c0_1, %c0_2] : memref<128x512xbf16, #tpu.memory_space<vmem>>, vector<128x512xbf16>
    %cst = arith.constant dense<0.000000e+00> : vector<128x512xf32>
    %2 = tpu.matmul %0, %1, %cst {dimension_numbers = #tpu.dot_dimension_numbers<[1], [0], [0], [1], [0, 0, 1, 1], [], []>} : vector<128x128xbf16>, vector<128x512xbf16>, vector<128x512xf32> -> vector<128x512xf32>
    %c0_3 = arith.constant 0 : index
    %c0_4 = arith.constant 0 : index
    %3 = vector.load %arg3[%c0_3, %c0_4] : memref<1x512xf32, #tpu.memory_space<vmem>>, vector<1x512xf32>
    %4 = vector.broadcast %3 : vector<1x512xf32> to vector<128x512xf32>
    %5 = arith.addf %2, %4 : vector<128x512xf32>
    %cst_5 = arith.constant 0.000000e+00 : f32
    %6 = vector.broadcast %cst_5 : f32 to vector<128x512xf32>
    %7 = arith.maximumf %5, %6 : vector<128x512xf32>
    %8 = arith.truncf %7 : vector<128x512xf32> to vector<128x512xbf16>
    %c0_6 = arith.constant 0 : index
    %c0_7 = arith.constant 0 : index
    %9 = vector.load %arg4[%c0_6, %c0_7] : memref<512x384xbf16, #tpu.memory_space<vmem>>, vector<512x384xbf16>
    %cst_8 = arith.constant dense<0.000000e+00> : vector<128x384xf32>
    %10 = tpu.matmul %8, %9, %cst_8 {dimension_numbers = #tpu.dot_dimension_numbers<[1], [0], [0], [1], [0, 0, 1, 1], [], []>} : vector<128x512xbf16>, vector<512x384xbf16>, vector<128x384xf32> -> vector<128x384xf32>
    %c0_9 = arith.constant 0 : index
    %c0_10 = arith.constant 0 : index
    %11 = vector.load %arg5[%c0_9, %c0_10] : memref<1x384xf32, #tpu.memory_space<vmem>>, vector<1x384xf32>
    %12 = vector.broadcast %11 : vector<1x384xf32> to vector<128x384xf32>
    %13 = arith.addf %10, %12 : vector<128x384xf32>
    %cst_11 = arith.constant 0.000000e+00 : f32
    %14 = vector.broadcast %cst_11 : f32 to vector<128x384xf32>
    %15 = arith.maximumf %13, %14 : vector<128x384xf32>
    %16 = arith.truncf %15 : vector<128x384xf32> to vector<128x384xbf16>
    %c0_12 = arith.constant 0 : index
    %c0_13 = arith.constant 0 : index
    %17 = vector.load %arg6[%c0_12, %c0_13] : memref<384x128xbf16, #tpu.memory_space<vmem>>, vector<384x128xbf16>
    %cst_14 = arith.constant dense<0.000000e+00> : vector<128x128xf32>
    %18 = tpu.matmul %16, %17, %cst_14 {dimension_numbers = #tpu.dot_dimension_numbers<[1], [0], [0], [1], [0, 0, 1, 1], [], []>} : vector<128x384xbf16>, vector<384x128xbf16>, vector<128x128xf32> -> vector<128x128xf32>
    %c0_15 = arith.constant 0 : index
    %c0_16 = arith.constant 0 : index
    %19 = vector.load %arg7[%c0_15, %c0_16] : memref<1x128xf32, #tpu.memory_space<vmem>>, vector<1x128xf32>
    %20 = vector.broadcast %19 : vector<1x128xf32> to vector<128x128xf32>
    %21 = arith.addf %18, %20 : vector<128x128xf32>
    %22 = math.tanh %21 : vector<128x128xf32>
    %23 = arith.truncf %22 : vector<128x128xf32> to vector<128x128xbf16>
    %c0_17 = arith.constant 0 : index
    %c0_18 = arith.constant 0 : index
    %24 = vector.load %arg8[%c0_17, %c0_18] : memref<128x128xbf16, #tpu.memory_space<vmem>>, vector<128x128xbf16>
    tpu.vector_store %arg8[%c0_17, %c0_18], %23 {strides = array<i32>} : memref<128x128xbf16, #tpu.memory_space<vmem>>, vector<128x128xbf16>,
    return
  }
  func.func @transform_0(%arg0: i32) -> (i32, i32) {
    %c0_i32 = arith.constant 0 : i32
    %c0_i32_0 = arith.constant 0 : i32
    return %arg0, %c0_i32 : i32, i32
  }
  func.func @transform_1(%arg0: i32) -> (i32, i32) {
    %c0_i32 = arith.constant 0 : i32
    %c0_i32_0 = arith.constant 0 : i32
    %c0_i32_1 = arith.constant 0 : i32
    return %c0_i32, %c0_i32_0 : i32, i32
  }
  func.func @transform_2(%arg0: i32) -> (i32, i32) {
    %c0_i32 = arith.constant 0 : i32
    %c0_i32_0 = arith.constant 0 : i32
    %c0_i32_1 = arith.constant 0 : i32
    return %c0_i32, %c0_i32_0 : i32, i32
  }
  func.func @transform_3(%arg0: i32) -> (i32, i32) {
    %c0_i32 = arith.constant 0 : i32
    %c0_i32_0 = arith.constant 0 : i32
    %c0_i32_1 = arith.constant 0 : i32
    return %c0_i32, %c0_i32_0 : i32, i32
  }
  func.func @transform_4(%arg0: i32) -> (i32, i32) {
    %c0_i32 = arith.constant 0 : i32
    %c0_i32_0 = arith.constant 0 : i32
    %c0_i32_1 = arith.constant 0 : i32
    return %c0_i32, %c0_i32_0 : i32, i32
  }
  func.func @transform_5(%arg0: i32) -> (i32, i32) {
    %c0_i32 = arith.constant 0 : i32
    %c0_i32_0 = arith.constant 0 : i32
    %c0_i32_1 = arith.constant 0 : i32
    return %c0_i32, %c0_i32_0 : i32, i32
  }
  func.func @transform_6(%arg0: i32) -> (i32, i32) {
    %c0_i32 = arith.constant 0 : i32
    %c0_i32_0 = arith.constant 0 : i32
    %c0_i32_1 = arith.constant 0 : i32
    return %c0_i32, %c0_i32_0 : i32, i32
  }
  func.func @transform_7(%arg0: i32) -> (i32, i32) {
    %c0_i32 = arith.constant 0 : i32
    %c0_i32_0 = arith.constant 0 : i32
    return %arg0, %c0_i32 : i32, i32
  }
}

</mosaic_0001>

<bundles_post_ra>
// kernel: _lambda_.1
= control target key start
LH: loop header
LB: loop body
LE: loop exit
PB: predicated region body
PF: predicated region fallthrough
CT: control target
= control target key end

     0   :  { %s3430_s24 = smov 0   ;;  %s4207_s0 = inlined_call_operand.vmem [shape: bf16[256,128], index: 0, kind: input, shape index: {}]   ;;  %s4208_s1 = inlined_call_operand.vmem [shape: bf16[128,512], index: 1, kind: input, shape index: {}]   ;;  %s4209_s2 = inlined_call_operand.vmem [shape: f32[1,512], index: 2, kind: input, shape index: {}]   ;;  %s4210_s3 = inlined_call_operand.vmem [shape: bf16[512,384], index: 3, kind: input, shape index: {}]   ;;  %s4211_s4 = inlined_call_operand.vmem [shape: f32[1,384], index: 4, kind: input, shape index: {}]   ;;  %s4212_s5 = inlined_call_operand.vmem [shape: bf16[384,128], index: 5, kind: input, shape index: {}]   ;;  %s4213_s6 = inlined_call_operand.vmem [shape: f32[1,128], index: 6, kind: input, shape index: {}]   ;;  %s4214_s7 = inlined_call_operand.vmem [shape: bf16[256,128], index: 7, kind: output, shape index: {}]  }
   0x1 LB: > { %s2577_s25 = sadd.s32 4294967295, %s3387_s24   ;;  %p2581_p0 = scmp.ge.s32.totalorder %s3387_s24, 1  ;;  %s3387_s24 = sphi %s3430_s24, %s17_s24  }
   0x2   : > { %p238_p1 = scmp.lt.s32.totalorder %s3387_s24, 3 }
   0x4   : > { %p239_p2 = pnand %p2581_p0, %p238_p1 }
   0x5   : > { %v3141_v0 = vld [vmem:[%s4208_s1 + $0x4] ss:$16 sps:$4 sm:$0xff] (!%p239_p2)   ;;  %s2582_s28 = sshll.u32 (!%p239_p2), %s2577_s25, 4  ;;  %v3143_v1 = vld [vmem:[%s4208_s1] ss:$16 sps:$4 sm:$0xff] (!%p239_p2)   ;;  %v3389_v2 = vmov (!%p239_p2), 0  }
   0x6   : > { %242 = sbr.rel (%p239_p2) target bundleno = 839 (0x347), region = 48  ;;  %593 = vmatprep.mubr.bf16.mxu0 (!%p239_p2), %v3389_v2  ;;  %p271_p3 = scmp.lt.s32.totalorder (!%p239_p2), %s2582_s28, 31  ;;  %706 = vmatprep.mubr.bf16.mxu1 (!%p239_p2), %v3389_v2  ;;  %v3144_v3 = vld [vmem:[%s4208_s1 + $0x24] ss:$16 sps:$4 sm:$0xff] (!%p239_p2)   ;;  %v3146_v4 = vld [vmem:[%s4208_s1 + $0x20] ss:$16 sps:$4 sm:$0xff] (!%p239_p2)  }
   0x7   : > { %561 = vmatprep.subr.bf16.mxu0 (!%p239_p2), %v3141_v0  ;;  %v3147_v5 = vld [vmem:[%s4208_s1 + $0x44] ss:$16 sps:$4 sm:$0xff] (!%p239_p2)   ;;  %v3149_v6 = vld [vmem:[%s4208_s1 + $0x40] ss:$16 sps:$4 sm:$0xff] (!%p239_p2)   ;;  %v3169_v11 = vld [vmem:[%s4208_s1 + $0xc] ss:$16 sps:$4 sm:$0xff] (!%p239_p2)  }
   0x8   : > { %562 = vmatpush1.bf16.msra.mxu0 (!%p239_p2), %v3143_v1  ;;  %v3150_v7 = vld [vmem:[%s4208_s1 + $0x64] ss:$16 sps:$4 sm:$0xff] (!%p239_p2)   ;;  %v3152_v8 = vld [vmem:[%s4208_s1 + $0x60] ss:$16 sps:$4 sm:$0xff] (!%p239_p2)   ;;  %v3171_v12 = vld [vmem:[%s4208_s1 + $0x8] ss:$16 sps:$4 sm:$0xff] (!%p239_p2)   ;;  %674 = vmatprep.subr.bf16.mxu1 (!%p239_p2), %v3169_v11 }
   0x9   : > { %563 = vmatprep.subr.bf16.mxu0 (!%p239_p2), %v3144_v3  ;;  %v3153_v9 = vld [vmem:[%s4208_s1 + $0x84] ss:$16 sps:$4 sm:$0xff] (!%p239_p2)   ;;  %v3155_v10 = vld [vmem:[%s4208_s1 + $0x80] ss:$16 sps:$4 sm:$0xff] (!%p239_p2)   ;;  %v3173_v14 = vld [vmem:[%s4208_s1 + $0x2c] ss:$16 sps:$4 sm:$0xff] (!%p239_p2)   ;;  %675 = vmatpush1.bf16.msra.mxu1 (!%p239_p2), %v3171_v12 }
   0xa   : > { %v3156_v13 = vld [vmem:[%s4208_s1 + $0xa4] ss:$16 sps:$4 sm:$0xff] (!%p239_p2)   ;;  %v3175_v15 = vld [vmem:[%s4208_s1 + $0x28] ss:$16 sps:$4 sm:$0xff] (!%p239_p2)   ;;  %v3158_v16 = vld [vmem:[%s4208_s1 + $0xa0] ss:$16 sps:$4 sm:$0xff] (!%p239_p2)   ;;  %676 = vmatprep.subr.bf16.mxu1 (!%p239_p2), %v3173_v14 }
   0xb   : > { %v3176_v17 = vld [vmem:[%s4208_s1 + $0x4c] ss:$16 sps:$4 sm:$0xff] (!%p239_p2)   ;;  %v3159_v18 = vld [vmem:[%s4208_s1 + $0xc4] ss:$16 sps:$4 sm:$0xff] (!%p239_p2)   ;;  %v3161_v19 = vld [vmem:[%s4208_s1 + $0xc0] ss:$16 sps:$4 sm:$0xff] (!%p239_p2)  }
   0xc   : > { %564 = vmatpush1.bf16.msra.mxu0 (!%p239_p2), %v3146_v4  ;;  %v3178_v20 = vld [vmem:[%s4208_s1 + $0x48] ss:$16 sps:$4 sm:$0xff] (!%p239_p2)   ;;  %v3180_v21 = vld [vmem:[%s4208_s1 + $0x6c] ss:$16 sps:$4 sm:$0xff] (!%p239_p2)   ;;  %v3162_v22 = vld [vmem:[%s4208_s1 + $0xe4] ss:$16 sps:$4 sm:$0xff] (!%p239_p2)  }
   0xd   : > { %s4216_s28 = smov (!%p271_p3, %s2582_s28), 31  ;;  %565 = vmatprep.subr.bf16.mxu0 %v3147_v5  ;;  %677 = vmatpush1.bf16.msra.mxu1 %v3175_v15  ;;  %v3164_v23 = vld [vmem:[%s4208_s1 + $0xe0] ss:$16 sps:$4 sm:$0xff]   ;;  %v3182_v24 = vld [vmem:[%s4208_s1 + $0x68] ss:$16 sps:$4 sm:$0xff]  }
   0xe   : > { %s2583_s14 = sshll.u32 %s4216_s28, 2  ;;  %678 = vmatprep.subr.bf16.mxu1 %v3176_v17  ;;  %v3183_v25 = vld [vmem:[%s4208_s1 + $0x8c] ss:$16 sps:$4 sm:$0xff]   ;;  %v3185_v27 = vld [vmem:[%s4208_s1 + $0x88] ss:$16 sps:$4 sm:$0xff]  }
   0xf   : > { %s3469_s21 = scalar_lea.vmem %s4207_s0, %s2583_s14  ;;  %v3199_v28 = vld [vmem:[%s4210_s3 + $0x4] ss:$12 sps:$4 sm:$0xff]   ;;  %v3187_v29 = vld [vmem:[%s4208_s1 + $0xac] ss:$16 sps:$4 sm:$0xff]   ;;  %v3189_v32 = vld [vmem:[%s4208_s1 + $0xa8] ss:$16 sps:$4 sm:$0xff]  }
  0x10   : > { %566 = vmatpush1.bf16.msra.mxu0 %v3149_v6  ;;  %v3165_v26 = vld [vmem:[%s3469_s21] sm:$0xff]   ;;  %v3203_v31 = vld [vmem:[%s4210_s3 + $0x1c] ss:$12 sps:$4 sm:$0xff]   ;;  %v3211_v40 = vld [vmem:[%s4210_s3 + $0x4c] ss:$12 sps:$4 sm:$0xff]  }
  0x11   : > { %567 = vmatprep.subr.bf16.mxu0 %v3150_v7  ;;  %679 = vmatpush1.bf16.msra.mxu1 %v3178_v20  ;;  %v3197_v30 = vld [vmem:[%s4210_s3] ss:$12 sps:$4 sm:$0xff]   ;;  %v3201_v34 = vld [vmem:[%s4210_s3 + $0x18] ss:$12 sps:$4 sm:$0xff]   ;;  %v3205_v39 = vld [vmem:[%s4210_s3 + $0x30] ss:$12 sps:$4 sm:$0xff]  }
  0x12   : > { %680 = vmatprep.subr.bf16.mxu1 %v3180_v21  ;;  %v3190_v33 = vld [vmem:[%s4208_s1 + $0xcc] ss:$16 sps:$4 sm:$0xff]   ;;  %v3207_v36 = vld [vmem:[%s4210_s3 + $0x34] ss:$12 sps:$4 sm:$0xff]   ;;  %v3192_v37 = vld [vmem:[%s4208_s1 + $0xc8] ss:$16 sps:$4 sm:$0xff]  }
  0x13   : > { %v3166_v35 = vld [vmem:[%s3469_s21 + $0x8] sm:$0xff]   ;;  %v3215_v44 = vld [vmem:[%s4210_s3 + $0x64] ss:$12 sps:$4 sm:$0xff]   ;;  %v3168_v53 = vld [vmem:[%s3469_s21 + $0x18] sm:$0xff]  }
  0x14   : > { %568 = vmatpush1.bf16.msra.mxu0 %v3152_v8  ;;  %v3194_v38 = vld [vmem:[%s4208_s1 + $0xec] ss:$16 sps:$4 sm:$0xff]   ;;  %v3196_v41 = vld [vmem:[%s4208_s1 + $0xe8] ss:$16 sps:$4 sm:$0xff]   ;;  %v3167_v45 = vld [vmem:[%s3469_s21 + $0x10] sm:$0xff]  }
  0x15   : > { %569 = vmatprep.subr.bf16.mxu0 %v3153_v9  ;;  %681 = vmatpush1.bf16.msra.mxu1 %v3182_v24  ;;  %v3200_v42 = vld [vmem:[%s4210_s3 + $0xc8] ss:$12 sps:$4 sm:$0xff]   ;;  %v3208_v47 = vld [vmem:[%s4210_s3 + $0xe0] ss:$12 sps:$4 sm:$0xff]   ;;  %v3216_v51 = vld [vmem:[%s4210_s3 + $0xf8] ss:$12 sps:$4 sm:$0xff]  }
  0x16   : > { %682 = vmatprep.subr.bf16.mxu1 %v3183_v25  ;;  %v3209_v43 = vld [vmem:[%s4210_s3 + $0x48] ss:$12 sps:$4 sm:$0xff]   ;;  %v3213_v48 = vld [vmem:[%s4210_s3 + $0x60] ss:$12 sps:$4 sm:$0xff]   ;;  %v3217_v52 = vld [vmem:[%s4210_s3 + $0x78] ss:$12 sps:$4 sm:$0xff]  }
  0x17   : > { %v3204_v46 = vld [vmem:[%s4210_s3 + $0x8] ss:$12 sps:$4 sm:$0xff]   ;;  %v3212_v50 = vld [vmem:[%s4210_s3 + $0x20] ss:$12 sps:$4 sm:$0xff]   ;;  %v3220_v55 = vld [vmem:[%s4210_s3 + $0x38] ss:$12 sps:$4 sm:$0xff]  }
  0x18   : > { %570 = vmatpush1.bf16.msra.mxu0 %v3155_v10  ;;  %v3219_v49 = vld [vmem:[%s4210_s3 + $0x7c] ss:$12 sps:$4 sm:$0xff]   ;;  %v3223_v54 = vld [vmem:[%s4210_s3 + $0x94] ss:$12 sps:$4 sm:$0xff]   ;;  %v3227_v58 = vld [vmem:[%s4210_s3 + $0xac] ss:$12 sps:$4 sm:$0xff]  }
  0x19   : > { %571 = vmatprep.subr.bf16.mxu0 %v3156_v13  ;;  %683 = vmatpush1.bf16.msra.mxu1 %v3185_v27  ;;  %v3221_v56 = vld [vmem:[%s4210_s3 + $0x90] ss:$12 sps:$4 sm:$0xff]   ;;  %v3225_v59 = vld [vmem:[%s4210_s3 + $0xa8] ss:$12 sps:$4 sm:$0xff]   ;;  %v3172_v61 = vld [vmem:[%s3469_s21 + $0x20] sm:$0xff]   ;;  %v333_v27 = vlaneseq }
  0x1a   : > { %684 = vmatprep.subr.bf16.mxu1 %v3187_v29  ;;  %v3224_v57 = vld [vmem:[%s4210_s3 + $0x110] ss:$12 sps:$4 sm:$0xff]   ;;  %v3232_v63 = vld [vmem:[%s4210_s3 + $0x128] ss:$12 sps:$4 sm:$0xff]   ;;  %v3229_v1 = vld [vmem:[%s4210_s3 + $0xc0] ss:$12 sps:$4 sm:$0xff]  }
  0x1b   : > { %v3228_v60 = vld [vmem:[%s4210_s3 + $0x50] ss:$12 sps:$4 sm:$0xff]   ;;  %v3236_v0 = vld [vmem:[%s4210_s3 + $0x68] ss:$12 sps:$4 sm:$0xff]   ;;  %v3240_v3 = vld [vmem:[%s4210_s3 + $0x140] ss:$12 sps:$4 sm:$0xff]  }
  0x1c   : > { %572 = vmatpush1.bf16.msra.mxu0 %v3158_v16  ;;  %v3231_v62 = vld [vmem:[%s4210_s3 + $0xc4] ss:$12 sps:$4 sm:$0xff]   ;;  %v3235_v4 = vld [vmem:[%s4210_s3 + $0xdc] ss:$12 sps:$4 sm:$0xff]   ;;  %v3244_v5 = vld [vmem:[%s4210_s3 + $0x80] ss:$12 sps:$4 sm:$0xff]  }
  0x1d   : > { %573 = vmatprep.subr.bf16.mxu0 %v3159_v18  ;;  %685 = vmatpush1.bf16.msra.mxu1 %v3189_v32  ;;  %v3233_v6 = vld [vmem:[%s4210_s3 + $0xd8] ss:$12 sps:$4 sm:$0xff]   ;;  %v3239_v8 = vld [vmem:[%s4210_s3 + $0xf4] ss:$12 sps:$4 sm:$0xff]   ;;  %v3179_v9 = vld [vmem:[%s3469_s21 + $0x28] sm:$0xff]  }
  0x1e   : > { %686 = vmatprep.subr.bf16.mxu1 %v3190_v33  ;;  %v3248_v7 = vld [vmem:[%s4210_s3 + $0x158] ss:$12 sps:$4 sm:$0xff]   ;;  %v3237_v11 = vld [vmem:[%s4210_s3 + $0xf0] ss:$12 sps:$4 sm:$0xff]   ;;  %v3241_v13 = vld [vmem:[%s4210_s3 + $0x108] ss:$12 sps:$4 sm:$0xff]  }
  0x1f   : > { %v3252_v10 = vld [vmem:[%s4210_s3 + $0x98] ss:$12 sps:$4 sm:$0xff]   ;;  %v3186_v15 = vld [vmem:[%s3469_s21 + $0x30] sm:$0xff]   ;;  %v3245_v16 = vld [vmem:[%s4210_s3 + $0x120] ss:$12 sps:$4 sm:$0xff]  }
  0x20   : > { %574 = vmatpush1.bf16.msra.mxu0 %v3161_v19  ;;  %v3243_v12 = vld [vmem:[%s4210_s3 + $0x10c] ss:$12 sps:$4 sm:$0xff]   ;;  %v3247_v14 = vld [vmem:[%s4210_s3 + $0x124] ss:$12 sps:$4 sm:$0xff]   ;;  %v3251_v17 = vld [vmem:[%s4210_s3 + $0x13c] ss:$12 sps:$4 sm:$0xff]  }
  0x21   : > { %575 = vmatprep.subr.bf16.mxu0 %v3162_v22  ;;  %687 = vmatpush1.bf16.msra.mxu1 %v3192_v37  ;;  %v3249_v18 = vld [vmem:[%s4210_s3 + $0x138] ss:$12 sps:$4 sm:$0xff]   ;;  %v3255_v20 = vld [vmem:[%s4210_s3 + $0x154] ss:$12 sps:$4 sm:$0xff]   ;;  %v3253_v21 = vld [vmem:[%s4210_s3 + $0x150] ss:$12 sps:$4 sm:$0xff]  }
  0x22   : > { %688 = vmatprep.subr.bf16.mxu1 %v3194_v38  ;;  %v3193_v19 = vld [vmem:[%s3469_s21 + $0x38] sm:$0xff]   ;;  %v3263_v25 = vld [vmem:[%s4210_s3 + $0x184] ss:$12 sps:$4 sm:$0xff]   ;;  %s4182_s21 = scalar_lea.vmem %s4214_s7, %s2583_s14 }
  0x23   : > { %v3256_v22 = vld [vmem:[%s4210_s3 + $0x170] ss:$12 sps:$4 sm:$0xff]  }
  0x24   : > { %576 = vmatpush1.bf16.msra.mxu0 %v3164_v23  ;;  %v3259_v23 = vld [vmem:[%s4210_s3 + $0x16c] ss:$12 sps:$4 sm:$0xff]   ;;  %v3260_v24 = vld [vmem:[%s4210_s3 + $0xb0] ss:$12 sps:$4 sm:$0xff]  }
  0x25   : > { %1540 = vmatprep.subr.bf16.mxu0 %v3199_v28  ;;  %689 = vmatpush1.bf16.msra.mxu1 %v3196_v41  ;;  %v3718_v28 = vshrl.u32 %v333_v27, 7 }
  0x26   : > { %2828 = vmatprep.subr.bf16.mxu1 %v3200_v42 }
  0x27   : > { %594 = vmatmul.mubr.bf16.vlgmr.msra.gmra.mrb[0].mxu0 %v3165_v26  ;;  %v335_v29 = vsub.s32 0, %v3718_v28 }
  0x28   : > { %603 = vmatprep.mubr.bf16.mxu0 %v3389_v2  ;;  %1541 = vmatpush1.bf16.msra.mxu0 %v3197_v30  ;;  %v331_v30 = vld [vmem:[%s4209_s2] sm:$0xf] }
  0x29   : > { %1542 = vmatprep.subr.bf16.mxu0 %v3203_v31  ;;  %707 = vmatmul.mubr.bf16.vlgmr.msra.gmra.mrb[0].mxu1 %v3165_v26  ;;  %v3264_v26 = vld [vmem:[%s4210_s3 + $0x248] ss:$12 sps:$4 sm:$0xff]   ;;  %v339_v31 = vsub.s32 1, %v3718_v28  ;;  %v3727_v32 = vrot.slane %v331_v30, %v335_v29 }
  0x2a   : > { %716 = vmatprep.mubr.bf16.mxu1 %v3389_v2  ;;  %2829 = vmatpush3.bf16.msra.mxu1 %v3204_v46 }
  0x2b   : > { %2830 = vmatprep.subr.bf16.mxu1 %v3208_v47  ;;  %v3731_v33 = vrot.slane %v331_v30, %v339_v31 }
  0x2c   : > { %1543 = vmatpush1.bf16.msra.mxu0 %v3201_v34 }
  0x2d   : > { %1544 = vmatprep.subr.bf16.mxu0 %v3207_v36 }
  0x2e   : > { %2831 = vmatpush3.bf16.msra.mxu1 %v3212_v50  ;;  %v3268_v50 = vld [vmem:[%s4210_s3 + $0x188] ss:$12 sps:$4 sm:$0xff]  }
  0x2f   : > { %604 = vmatmul.mubr.bf16.gmra.mrb[4].mxu0 %v3166_v35  ;;  %2832 = vmatprep.subr.bf16.mxu1 %v3216_v51  ;;  %v343_v51 = vsub.s32 2, %v3718_v28 }
  0x30   : > { %613 = vmatprep.mubr.bf16.mxu0 %v3389_v2  ;;  %1545 = vmatpush1.bf16.msra.mxu0 %v3205_v39 }
  0x31   : > { %1546 = vmatprep.subr.bf16.mxu0 %v3211_v40  ;;  %717 = vmatmul.mubr.bf16.gmra.mrb[4].mxu1 %v3166_v35 }
  0x32   : > { %726 = vmatprep.mubr.bf16.mxu1 %v3389_v2  ;;  %2833 = vmatpush3.bf16.msra.mxu1 %v3220_v55  ;;  %v3272_v55 = vld [vmem:[%s4210_s3 + $0x260] ss:$12 sps:$4 sm:$0xff]  }
  0x33   : > { %2834 = vmatprep.subr.bf16.mxu1 %v3224_v57 }
  0x34   : > { %1547 = vmatpush1.bf16.msra.mxu0 %v3209_v43 }
  0x35   : > { %1548 = vmatprep.subr.bf16.mxu0 %v3215_v44 }
  0x36   : > { %2835 = vmatpush3.bf16.msra.mxu1 %v3228_v60 }
  0x37   : > { %614 = vmatmul.mubr.bf16.gmra.mrb[8].mxu0 %v3167_v45  ;;  %2836 = vmatprep.subr.bf16.mxu1 %v3232_v63  ;;  %v3276_v63 = vld [vmem:[%s4210_s3 + $0x1a0] ss:$12 sps:$4 sm:$0xff]  }
  0x38   : > { %623 = vmatprep.mubr.bf16.mxu0 %v3389_v2  ;;  %1549 = vmatpush1.bf16.msra.mxu0 %v3213_v48 }
  0x39   : > { %1550 = vmatprep.subr.bf16.mxu0 %v3219_v49  ;;  %727 = vmatmul.mubr.bf16.gmra.mrb[8].mxu1 %v3167_v45  ;;  %v3261_v49 = vld [vmem:[%s4210_s3 + $0x180] ss:$12 sps:$4 sm:$0xff]  }
  0x3a   : > { %736 = vmatprep.mubr.bf16.mxu1 %v3389_v2  ;;  %2837 = vmatpush3.bf16.msra.mxu1 %v3236_v0  ;;  %v3763_v0 = vrot.slane %v331_v30, %v343_v51 }
  0x3b   : > { %2838 = vmatprep.subr.bf16.mxu1 %v3240_v3 }
  0x3c   : > { %1551 = vmatpush1.bf16.msra.mxu0 %v3217_v52 }
  0x3d   : > { %1552 = vmatprep.subr.bf16.mxu0 %v3223_v54  ;;  %v3267_v54 = vld [vmem:[%s4210_s3 + $0x19c] ss:$12 sps:$4 sm:$0xff]  }
  0x3e   : > { %2839 = vmatpush3.bf16.msra.mxu1 %v3244_v5  ;;  %v3280_v5 = vld [vmem:[%s4210_s3 + $0x278] ss:$12 sps:$4 sm:$0xff]  }
  0x3f   : > { %624 = vmatmul.mubr.bf16.gmra.mrb[12].mxu0 %v3168_v53  ;;  %2840 = vmatprep.subr.bf16.mxu1 %v3248_v7 }
  0x40   : > { %633 = vmatprep.mubr.bf16.mxu0 %v3389_v2  ;;  %1553 = vmatpush1.bf16.msra.mxu0 %v3221_v56  ;;  %v347_v56 = vsub.s32 3, %v3718_v28 }
  0x41   : > { %1554 = vmatprep.subr.bf16.mxu0 %v3227_v58  ;;  %737 = vmatmul.mubr.bf16.gmra.mrb[12].mxu1 %v3168_v53 }
  0x42   : > { %746 = vmatprep.mubr.bf16.mxu1 %v3389_v2  ;;  %2841 = vmatpush3.bf16.msra.mxu1 %v3252_v10 }
  0x43   : > { %2842 = vmatprep.subr.bf16.mxu1 %v3256_v22 }
  0x44   : > { %1555 = vmatpush1.bf16.msra.mxu0 %v3225_v59 }
  0x45   : > { %1556 = vmatprep.subr.bf16.mxu0 %v3231_v62  ;;  %v3265_v62 = vld [vmem:[%s4210_s3 + $0x198] ss:$12 sps:$4 sm:$0xff]  }
  0x46   : > { %2843 = vmatpush3.bf16.msra.mxu1 %v3260_v24 }
  0x47   : > { %634 = vmatmul.mubr.bf16.gmra.mrb[16].mxu0 %v3172_v61  ;;  %2892 = vmatprep.subr.bf16.mxu1 %v3264_v26 }
  0x48   : > { %643 = vmatprep.mubr.bf16.mxu0 %v3389_v2  ;;  %1557 = vmatpush1.bf16.msra.mxu0 %v3229_v1 }
  0x49   : > { %1558 = vmatprep.subr.bf16.mxu0 %v3235_v4  ;;  %747 = vmatmul.mubr.bf16.gmra.mrb[16].mxu1 %v3172_v61  ;;  %v3271_v4 = vld [vmem:[%s4210_s3 + $0x1b4] ss:$12 sps:$4 sm:$0xff]  }
  0x4a   : > { %756 = vmatprep.mubr.bf16.mxu1 %v3389_v2 }
  0x4c   : > { %1559 = vmatpush1.bf16.msra.mxu0 %v3233_v6  ;;  %v3771_v6 = vrot.slane %v331_v30, %v347_v56 }
  0x4d   : > { %1560 = vmatprep.subr.bf16.mxu0 %v3239_v8 }
  0x4f   : > { %644 = vmatmul.mubr.bf16.gmra.mrb[20].mxu0 %v3179_v9 }
  0x50   : > { %653 = vmatprep.mubr.bf16.mxu0 %v3389_v2  ;;  %1561 = vmatpush1.bf16.msra.mxu0 %v3237_v11 }
  0x51   : > { %1562 = vmatprep.subr.bf16.mxu0 %v3243_v12  ;;  %757 = vmatmul.mubr.bf16.gmra.mrb[20].mxu1 %v3179_v9 }
  0x52   : > { %766 = vmatprep.mubr.bf16.mxu1 %v3389_v2 }
  0x54   : > { %1563 = vmatpush1.bf16.msra.mxu0 %v3241_v13  ;;  %v3269_v13 = vld [vmem:[%s4210_s3 + $0x1b0] ss:$12 sps:$4 sm:$0xff]  }
  0x55   : > { %1564 = vmatprep.subr.bf16.mxu0 %v3247_v14  ;;  %v3284_v14 = vld [vmem:[%s4210_s3 + $0x1b8] ss:$12 sps:$4 sm:$0xff]  }
  0x57   : > { %654 = vmatmul.mubr.bf16.gmra.mrb[24].mxu0 %v3186_v15 }
  0x58   : > { %663 = vmatprep.mubr.bf16.mxu0 %v3389_v2  ;;  %1565 = vmatpush1.bf16.msra.mxu0 %v3245_v16 }
  0x59   : > { %1566 = vmatprep.subr.bf16.mxu0 %v3251_v17  ;;  %767 = vmatmul.mubr.bf16.gmra.mrb[24].mxu1 %v3186_v15 }
  0x5a   : > { %776 = vmatprep.mubr.bf16.mxu1 %v3389_v2  ;;  %v3257_v2 = vld [vmem:[%s4210_s3 + $0x168] ss:$12 sps:$4 sm:$0xff]  }
  0x5c   : > { %1567 = vmatpush1.bf16.msra.mxu0 %v3249_v18 }
  0x5d   : > { %1568 = vmatprep.subr.bf16.mxu0 %v3255_v20  ;;  %v3288_v20 = vld [vmem:[%s4210_s3 + $0x290] ss:$12 sps:$4 sm:$0xff]  }
  0x5f   : > { %664 = vmatmul.mubr.bf16.gmra.mrb[28].mxu0 %v3193_v19 }
  0x60   : > { %1569 = vmatpush1.bf16.msra.mxu0 %v3253_v21 }
  0x61   : > { %777 = vmatmul.mubr.bf16.gmra.mrb[28].mxu1 %v3193_v19  ;;  %1570 = vmatprep.subr.bf16.mxu0 %v3259_v23  ;;  %v3275_v19 = vld [vmem:[%s4210_s3 + $0x1cc] ss:$12 sps:$4 sm:$0xff]  }
  0x64   : > { %1571 = vmatpush1.bf16.msra.mxu0 %v3257_v2 }
  0x65   : > { %1653 = vmatprep.subr.bf16.mxu0 %v3263_v25 }
  0xfa   : > { %v595_v34 = vpop.f32.mrb[0].mxu0 }
  0xfb   : > { %v596_v35 = vadd.f32 %v595_v34, %v3727_v32  ;;  %v597_v36 = vpop.f32.mrb[1].mxu0  ;;  %v3273_v34 = vld [vmem:[%s4210_s3 + $0x1c8] ss:$12 sps:$4 sm:$0xff]  }
  0xfc   : > { %v598_v37 = vadd.f32 %v597_v36, %v3731_v33  ;;  %v599_v38 = vpop.f32.mrb[2].mxu0  ;;  %v708_v10 = vpop.f32.mrb[0].mxu1 }
  0xfd   : > { %v600_v39 = vadd.f32 %v599_v38, %v3727_v32  ;;  %v601_v40 = vpop.f32.mrb[3].mxu0  ;;  %v787_v42 = vmax.f32 %v596_v35, 0.0  ;;  %v709_v15 = vadd.f32 %v708_v10, %v3763_v0  ;;  %v710_v16 = vpop.f32.mrb[1].mxu1  ;;  %v3279_v38 = vld [vmem:[%s4210_s3 + $0x1e4] ss:$12 sps:$4 sm:$0xff]  }
  0xfe   : > { %v602_v41 = vadd.f32 %v601_v40, %v3731_v33  ;;  %v788_v44 = vmax.f32 %v598_v37, 0.0  ;;  %v711_v21 = vadd.f32 %v710_v16, %v3771_v6  ;;  %v712_v22 = vpop.f32.mrb[2].mxu1  ;;  %v3281_v10 = vld [vmem:[%s4210_s3 + $0x1f8] ss:$12 sps:$4 sm:$0xff]  }
  0xff   : > { %v791_v43 = vmax.f32 %v600_v39, 0.0  ;;  %v789_v24 = vmax.f32 %v709_v15, 0.0  ;;  %v713_v25 = vadd.f32 %v712_v22, %v3763_v0  ;;  %v714_v26 = vpop.f32.mrb[3].mxu1  ;;  %v3292_v39 = vld [vmem:[%s4210_s3 + $0x1d0] ss:$12 sps:$4 sm:$0xff]  }
 0x100   : > { %v792_v45 = vmax.f32 %v602_v41, 0.0  ;;  %v790_v35 = vmax.f32 %v711_v21, 0.0  ;;  %v715_v36 = vadd.f32 %v714_v26, %v3771_v6  ;;  %v3308_v15 = vld [vmem:[%s4210_s3 + $0x200] ss:$12 sps:$4 sm:$0xff]  }
 0x101   : > { %v851_v46 = vpack.c.bf16 %v791_v43, %v787_v42  ;;  %v793_v40 = vmax.f32 %v713_v25, 0.0  ;;  %v3296_v43 = vld [vmem:[%s4210_s3 + $0x2a8] ss:$12 sps:$4 sm:$0xff]  }
 0x102   : > { %v852_v47 = vpack.c.bf16 %v792_v45, %v788_v44  ;;  %v605_v48 = vpop.f32.mrb[4].mxu0  ;;  %v794_v44 = vmax.f32 %v715_v36, 0.0 }
 0x103   : > { %v606_v52 = vadd.f32 %v605_v48, %v3727_v32  ;;  %v607_v53 = vpop.f32.mrb[5].mxu0 }
 0x104   : > { %v608_v57 = vadd.f32 %v607_v53, %v3731_v33  ;;  %v609_v58 = vpop.f32.mrb[6].mxu0  ;;  %1572 = vmatprep.mubr.bf16.mxu0 %v852_v47  ;;  %1798 = vmatprep.mubr.bf16.mxu1 %v852_v47  ;;  %v3805_v47 = vpack.c.bf16 %v793_v40, %v789_v24  ;;  %v3320_v40 = vld [vmem:[%s4210_s3 + $0x2f0] ss:$12 sps:$4 sm:$0xff]  }
 0x105   : > { %v610_v59 = vadd.f32 %v609_v58, %v3727_v32  ;;  %v611_v60 = vpop.f32.mrb[7].mxu0  ;;  %1573 = vmatmul.mubr.bf16.vlgmr.msra.gmra.mrb[32].mxu0 %v851_v46  ;;  %1799 = vmatmul.mubr.bf16.vlgmr.msra.gmra.mrb[32].mxu1 %v851_v46  ;;  %v795_v1 = vmax.f32 %v606_v52, 0.0 }
 0x106   : > { %v612_v61 = vadd.f32 %v611_v60, %v3731_v33  ;;  %1654 = vmatpush1.bf16.msra.mxu0 %v3261_v49  ;;  %2893 = vmatpush3.bf16.msra.mxu1 %v3268_v50  ;;  %v796_v7 = vmax.f32 %v608_v57, 0.0  ;;  %v3807_v49 = vpack.c.bf16 %v794_v44, %v790_v35  ;;  %v718_v50 = vpop.f32.mrb[4].mxu1  ;;  %v3283_v60 = vld [vmem:[%s4210_s3 + $0x1fc] ss:$12 sps:$4 sm:$0xff]  }
 0x107   : > { %v799_v3 = vmax.f32 %v610_v59, 0.0  ;;  %1655 = vmatprep.subr.bf16.mxu0 %v3267_v54  ;;  %2894 = vmatprep.subr.bf16.mxu1 %v3272_v55  ;;  %v3277_v54 = vld [vmem:[%s4210_s3 + $0x1e0] ss:$12 sps:$4 sm:$0xff]   ;;  %v3300_v55 = vld [vmem:[%s4210_s3 + $0x1e8] ss:$12 sps:$4 sm:$0xff]   ;;  %v719_v56 = vadd.f32 %v718_v50, %v3763_v0  ;;  %v720_v57 = vpop.f32.mrb[5].mxu1 }
 0x108   : > { %v800_v8 = vmax.f32 %v612_v61, 0.0  ;;  %v3304_v61 = vld [vmem:[%s4210_s3 + $0x2c0] ss:$12 sps:$4 sm:$0xff]  }
 0x109   : > { %v855_v9 = vpack.c.bf16 %v799_v3, %v795_v1 }
 0x10a   : > { %v856_v11 = vpack.c.bf16 %v800_v8, %v796_v7  ;;  %1656 = vmatpush1.bf16.msra.mxu0 %v3265_v62  ;;  %v615_v12 = vpop.f32.mrb[8].mxu0  ;;  %2895 = vmatpush3.bf16.msra.mxu1 %v3276_v63  ;;  %v721_v62 = vadd.f32 %v720_v57, %v3771_v6  ;;  %v722_v63 = vpop.f32.mrb[6].mxu1  ;;  %v3324_v57 = vld [vmem:[%s4210_s3 + $0x230] ss:$12 sps:$4 sm:$0xff]  }
 0x10b   : > { %v616_v17 = vadd.f32 %v615_v12, %v3727_v32  ;;  %v617_v18 = vpop.f32.mrb[9].mxu0  ;;  %1657 = vmatprep.subr.bf16.mxu0 %v3271_v4  ;;  %2896 = vmatprep.subr.bf16.mxu1 %v3280_v5  ;;  %v797_v4 = vmax.f32 %v719_v56, 0.0  ;;  %v723_v5 = vadd.f32 %v722_v63, %v3763_v0  ;;  %v724_v7 = vpop.f32.mrb[7].mxu1  ;;  %v3289_v56 = vld [vmem:[%s4210_s3 + $0x228] ss:$12 sps:$4 sm:$0xff]  }
 0x10c   : > { %v618_v23 = vadd.f32 %v617_v18, %v3731_v33  ;;  %v619_v2 = vpop.f32.mrb[10].mxu0  ;;  %1582 = vmatprep.mubr.bf16.mxu0 %v856_v11  ;;  %1806 = vmatprep.mubr.bf16.mxu1 %v856_v11  ;;  %v798_v11 = vmax.f32 %v721_v62, 0.0  ;;  %v725_v12 = vadd.f32 %v724_v7, %v3771_v6  ;;  %v728_v25 = vpop.f32.mrb[8].mxu1 }
 0x10d   : > { %v620_v27 = vadd.f32 %v619_v2, %v3727_v32  ;;  %v621_v30 = vpop.f32.mrb[11].mxu0  ;;  %1583 = vmatmul.mubr.bf16.gmra.mrb[36].mxu0 %v855_v9  ;;  %1807 = vmatmul.mubr.bf16.gmra.mrb[36].mxu1 %v855_v9  ;;  %v803_v41 = vmax.f32 %v616_v17, 0.0  ;;  %v801_v16 = vmax.f32 %v723_v5, 0.0  ;;  %v729_v35 = vadd.f32 %v728_v25, %v3763_v0  ;;  %v730_v36 = vpop.f32.mrb[9].mxu1 }
 0x10e   : > { %v622_v37 = vadd.f32 %v621_v30, %v3731_v33  ;;  %1658 = vmatpush1.bf16.msra.mxu0 %v3269_v13  ;;  %2897 = vmatpush3.bf16.msra.mxu1 %v3284_v14  ;;  %v804_v45 = vmax.f32 %v618_v23, 0.0  ;;  %v3287_v14 = vld [vmem:[%s4210_s3 + $0x214] ss:$12 sps:$4 sm:$0xff]   ;;  %v3285_v30 = vld [vmem:[%s4210_s3 + $0x210] ss:$12 sps:$4 sm:$0xff]  }
 0x10f   : > { %v807_v42 = vmax.f32 %v620_v27, 0.0  ;;  %1659 = vmatprep.subr.bf16.mxu0 %v3275_v19  ;;  %2898 = vmatprep.subr.bf16.mxu1 %v3288_v20  ;;  %v3312_v19 = vld [vmem:[%s4210_s3 + $0x2d8] ss:$12 sps:$4 sm:$0xff]   ;;  %v802_v20 = vmax.f32 %v725_v12, 0.0  ;;  %v3841_v23 = vpack.c.bf16 %v801_v16, %v797_v4 }
 0x110   : > { %v808_v46 = vmax.f32 %v622_v37, 0.0 }
 0x111   : > { %v859_v48 = vpack.c.bf16 %v807_v42, %v803_v41  ;;  %v3843_v24 = vpack.c.bf16 %v802_v20, %v798_v11  ;;  %v731_v41 = vadd.f32 %v730_v36, %v3771_v6  ;;  %v732_v42 = vpop.f32.mrb[10].mxu1 }
 0x112   : > { %v860_v52 = vpack.c.bf16 %v808_v46, %v804_v45  ;;  %1660 = vmatpush1.bf16.msra.mxu0 %v3273_v34  ;;  %v625_v53 = vpop.f32.mrb[12].mxu0  ;;  %2899 = vmatpush3.bf16.msra.mxu1 %v3292_v39  ;;  %v3316_v34 = vld [vmem:[%s4210_s3 + $0x218] ss:$12 sps:$4 sm:$0xff]   ;;  %v805_v45 = vmax.f32 %v729_v35, 0.0  ;;  %v733_v46 = vadd.f32 %v732_v42, %v3763_v0 }
 0x113   : > { %v626_v58 = vadd.f32 %v625_v53, %v3727_v32  ;;  %v627_v59 = vpop.f32.mrb[13].mxu0  ;;  %1661 = vmatprep.subr.bf16.mxu0 %v3279_v38  ;;  %2900 = vmatprep.subr.bf16.mxu1 %v3296_v43  ;;  %v3291_v39 = vld [vmem:[%s4210_s3 + $0x22c] ss:$12 sps:$4 sm:$0xff]   ;;  %v806_v53 = vmax.f32 %v731_v41, 0.0 }
 0x114   : > { %v628_v1 = vadd.f32 %v627_v59, %v3731_v33  ;;  %v629_v3 = vpop.f32.mrb[14].mxu0  ;;  %1592 = vmatprep.mubr.bf16.mxu0 %v860_v52  ;;  %1814 = vmatprep.mubr.bf16.mxu1 %v860_v52 }
 0x115   : > { %v630_v8 = vadd.f32 %v629_v3, %v3727_v32  ;;  %v631_v9 = vpop.f32.mrb[15].mxu0  ;;  %1593 = vmatmul.mubr.bf16.gmra.mrb[40].mxu0 %v859_v48  ;;  %1815 = vmatmul.mubr.bf16.gmra.mrb[40].mxu1 %v859_v48  ;;  %v811_v17 = vmax.f32 %v626_v58, 0.0  ;;  %v734_v48 = vpop.f32.mrb[11].mxu1  ;;  %v809_v58 = vmax.f32 %v733_v46, 0.0 }
 0x116   : > { %v632_v13 = vadd.f32 %v631_v9, %v3731_v33  ;;  %1662 = vmatpush1.bf16.msra.mxu0 %v3277_v54  ;;  %2901 = vmatpush3.bf16.msra.mxu1 %v3300_v55  ;;  %v812_v21 = vmax.f32 %v628_v1, 0.0  ;;  %v735_v54 = vadd.f32 %v734_v48, %v3771_v6  ;;  %v738_v7 = vpop.f32.mrb[12].mxu1 }
 0x117   : > { %v815_v18 = vmax.f32 %v630_v8, 0.0  ;;  %1663 = vmatprep.subr.bf16.mxu0 %v3283_v60  ;;  %2902 = vmatprep.subr.bf16.mxu1 %v3304_v61  ;;  %v3295_v61 = vld [vmem:[%s4210_s3 + $0x244] ss:$12 sps:$4 sm:$0xff]   ;;  %v3874_v3 = vpack.c.bf16 %v809_v58, %v805_v45  ;;  %v739_v11 = vadd.f32 %v738_v7, %v3763_v0  ;;  %v740_v12 = vpop.f32.mrb[13].mxu1 }
 0x118   : > { %v816_v22 = vmax.f32 %v632_v13, 0.0  ;;  %v810_v62 = vmax.f32 %v735_v54, 0.0  ;;  %v741_v16 = vadd.f32 %v740_v12, %v3771_v6 }
 0x119   : > { %v863_v2 = vpack.c.bf16 %v815_v18, %v811_v17  ;;  %v742_v17 = vpop.f32.mrb[14].mxu1  ;;  %v813_v20 = vmax.f32 %v739_v11, 0.0 }
 0x11a   : > { %v864_v26 = vpack.c.bf16 %v816_v22, %v812_v21  ;;  %1664 = vmatpush1.bf16.msra.mxu0 %v3281_v10  ;;  %v635_v27 = vpop.f32.mrb[16].mxu0  ;;  %2903 = vmatpush3.bf16.msra.mxu1 %v3308_v15  ;;  %v3876_v5 = vpack.c.bf16 %v810_v62, %v806_v53  ;;  %v3293_v10 = vld [vmem:[%s4210_s3 + $0x240] ss:$12 sps:$4 sm:$0xff]   ;;  %v3299_v15 = vld [vmem:[%s4210_s3 + $0x25c] ss:$12 sps:$4 sm:$0xff]   ;;  %v743_v21 = vadd.f32 %v742_v17, %v3763_v0  ;;  %v744_v22 = vpop.f32.mrb[15].mxu1 }
 0x11b   : > { %v636_v37 = vadd.f32 %v635_v27, %v3727_v32  ;;  %v637_v38 = vpop.f32.mrb[17].mxu0  ;;  %1665 = vmatprep.subr.bf16.mxu0 %v3287_v14  ;;  %2904 = vmatprep.subr.bf16.mxu1 %v3312_v19  ;;  %v745_v27 = vadd.f32 %v744_v22, %v3771_v6 }
 0x11c   : > { %v638_v43 = vadd.f32 %v637_v38, %v3731_v33  ;;  %v639_v44 = vpop.f32.mrb[18].mxu0  ;;  %1602 = vmatprep.mubr.bf16.mxu0 %v864_v26  ;;  %1822 = vmatprep.mubr.bf16.mxu1 %v864_v26  ;;  %v814_v26 = vmax.f32 %v741_v16, 0.0  ;;  %v817_v35 = vmax.f32 %v743_v21, 0.0  ;;  %v3303_v38 = vld [vmem:[%s4210_s3 + $0x274] ss:$12 sps:$4 sm:$0xff]   ;;  %v748_v45 = vpop.f32.mrb[16].mxu1 }
 0x11d   : > { %v640_v50 = vadd.f32 %v639_v44, %v3727_v32  ;;  %v641_v52 = vpop.f32.mrb[19].mxu0  ;;  %1603 = vmatmul.mubr.bf16.gmra.mrb[44].mxu0 %v863_v2  ;;  %1823 = vmatmul.mubr.bf16.gmra.mrb[44].mxu1 %v863_v2  ;;  %v819_v59 = vmax.f32 %v636_v37, 0.0  ;;  %v750_v53 = vpop.f32.mrb[17].mxu1 }
 0x11e   : > { %v642_v55 = vadd.f32 %v641_v52, %v3731_v33  ;;  %1666 = vmatpush1.bf16.msra.mxu0 %v3285_v30  ;;  %2905 = vmatpush3.bf16.msra.mxu1 %v3316_v34  ;;  %v820_v63 = vmax.f32 %v638_v43, 0.0  ;;  %v3297_v34 = vld [vmem:[%s4210_s3 + $0x258] ss:$12 sps:$4 sm:$0xff]   ;;  %v3898_v42 = vpack.c.bf16 %v817_v35, %v813_v20  ;;  %v749_v52 = vadd.f32 %v748_v45, %v3763_v0  ;;  %v752_v58 = vpop.f32.mrb[18].mxu1  ;;  %v3315_v35 = vld [vmem:[%s4210_s3 + $0x2bc] ss:$12 sps:$4 sm:$0xff]  }
 0x11f   : > { %v823_v60 = vmax.f32 %v640_v50, 0.0  ;;  %1667 = vmatprep.subr.bf16.mxu0 %v3291_v39  ;;  %2906 = vmatprep.subr.bf16.mxu1 %v3320_v40  ;;  %v818_v39 = vmax.f32 %v745_v27, 0.0  ;;  %v3301_v50 = vld [vmem:[%s4210_s3 + $0x270] ss:$12 sps:$4 sm:$0xff]   ;;  %v753_v62 = vadd.f32 %v752_v58, %v3763_v0 }
 0x120   : > { %v824_v1 = vmax.f32 %v642_v55, 0.0 }
 0x121   : > { %v867_v4 = vpack.c.bf16 %v823_v60, %v819_v59  ;;  %v3900_v44 = vpack.c.bf16 %v818_v39, %v814_v26  ;;  %v825_v11 = vmax.f32 %v753_v62, 0.0 }
 0x122   : > { %v868_v8 = vpack.c.bf16 %v824_v1, %v820_v63  ;;  %1668 = vmatpush1.bf16.msra.mxu0 %v3289_v56  ;;  %v645_v9 = vpop.f32.mrb[20].mxu0  ;;  %2907 = vmatpush3.bf16.msra.mxu1 %v3324_v57  ;;  %v3307_v56 = vld [vmem:[%s4210_s3 + $0x28c] ss:$12 sps:$4 sm:$0xff]   ;;  %v751_v57 = vadd.f32 %v750_v53, %v3771_v6  ;;  %v754_v63 = vpop.f32.mrb[19].mxu1 }
 0x123   : > { %v646_v13 = vadd.f32 %v645_v9, %v3727_v32  ;;  %v647_v14 = vpop.f32.mrb[21].mxu0  ;;  %1669 = vmatprep.subr.bf16.mxu0 %v3295_v61  ;;  %v821_v61 = vmax.f32 %v749_v52, 0.0  ;;  %v3313_v53 = vld [vmem:[%s4210_s3 + $0x2b8] ss:$12 sps:$4 sm:$0xff]  }
 0x124   : > { %v648_v18 = vadd.f32 %v647_v14, %v3731_v33  ;;  %v649_v19 = vpop.f32.mrb[22].mxu0  ;;  %1612 = vmatprep.mubr.bf16.mxu0 %v868_v8  ;;  %1830 = vmatprep.mubr.bf16.mxu1 %v868_v8  ;;  %v822_v7 = vmax.f32 %v751_v57, 0.0  ;;  %v755_v8 = vadd.f32 %v754_v63, %v3771_v6  ;;  %v3311_v14 = vld [vmem:[%s4210_s3 + $0x2a4] ss:$12 sps:$4 sm:$0xff]   ;;  %v758_v21 = vpop.f32.mrb[20].mxu1 }
 0x125   : > { %v650_v2 = vadd.f32 %v649_v19, %v3727_v32  ;;  %v651_v25 = vpop.f32.mrb[23].mxu0  ;;  %1613 = vmatmul.mubr.bf16.gmra.mrb[48].mxu0 %v867_v4  ;;  %1831 = vmatmul.mubr.bf16.gmra.mrb[48].mxu1 %v867_v4  ;;  %v827_v36 = vmax.f32 %v646_v13, 0.0  ;;  %v759_v26 = vadd.f32 %v758_v21, %v3763_v0  ;;  %v760_v27 = vpop.f32.mrb[21].mxu1 }
 0x126   : > { %v652_v30 = vadd.f32 %v651_v25, %v3731_v33  ;;  %1670 = vmatpush1.bf16.msra.mxu0 %v3293_v10  ;;  %v828_v40 = vmax.f32 %v648_v18, 0.0  ;;  %v3305_v10 = vld [vmem:[%s4210_s3 + $0x288] ss:$12 sps:$4 sm:$0xff]   ;;  %v3922_v18 = vpack.c.bf16 %v825_v11, %v821_v61  ;;  %v3309_v25 = vld [vmem:[%s4210_s3 + $0x2a0] ss:$12 sps:$4 sm:$0xff]  }
 0x127   : > { %v831_v37 = vmax.f32 %v650_v2, 0.0  ;;  %1671 = vmatprep.subr.bf16.mxu0 %v3299_v15  ;;  %v826_v15 = vmax.f32 %v755_v8, 0.0  ;;  %v3323_v8 = vld [vmem:[%s4210_s3 + $0x2ec] ss:$12 sps:$4 sm:$0xff]  }
 0x128   : > { %v832_v41 = vmax.f32 %v652_v30, 0.0 }
 0x129   : > { %v871_v43 = vpack.c.bf16 %v831_v37, %v827_v36  ;;  %v3924_v20 = vpack.c.bf16 %v826_v15, %v822_v7  ;;  %v761_v36 = vadd.f32 %v760_v27, %v3771_v6  ;;  %v762_v37 = vpop.f32.mrb[22].mxu1 }
 0x12a   : > { %v872_v46 = vpack.c.bf16 %v832_v41, %v828_v40  ;;  %1672 = vmatpush1.bf16.msra.mxu0 %v3297_v34  ;;  %v655_v48 = vpop.f32.mrb[24].mxu0  ;;  %v829_v40 = vmax.f32 %v759_v26, 0.0  ;;  %v763_v41 = vadd.f32 %v762_v37, %v3763_v0 }
 0x12b   : > { %v656_v54 = vadd.f32 %v655_v48, %v3727_v32  ;;  %v657_v55 = vpop.f32.mrb[25].mxu0  ;;  %1673 = vmatprep.subr.bf16.mxu0 %v3303_v38  ;;  %v830_v48 = vmax.f32 %v761_v36, 0.0 }
 0x12c   : > { %v658_v59 = vadd.f32 %v657_v55, %v3731_v33  ;;  %v659_v60 = vpop.f32.mrb[26].mxu0  ;;  %1622 = vmatprep.mubr.bf16.mxu0 %v872_v46  ;;  %1838 = vmatprep.mubr.bf16.mxu1 %v872_v46 }
 0x12d   : > { %v660_v1 = vadd.f32 %v659_v60, %v3727_v32  ;;  %v661_v4 = vpop.f32.mrb[27].mxu0  ;;  %1623 = vmatmul.mubr.bf16.gmra.mrb[52].mxu0 %v871_v43  ;;  %1839 = vmatmul.mubr.bf16.gmra.mrb[52].mxu1 %v871_v43  ;;  %v835_v12 = vmax.f32 %v656_v54, 0.0  ;;  %v764_v43 = vpop.f32.mrb[23].mxu1  ;;  %v833_v54 = vmax.f32 %v763_v41, 0.0 }
 0x12e   : > { %v662_v9 = vadd.f32 %v661_v4, %v3731_v33  ;;  %1674 = vmatpush1.bf16.msra.mxu0 %v3301_v50  ;;  %v836_v16 = vmax.f32 %v658_v59, 0.0  ;;  %v765_v50 = vadd.f32 %v764_v43, %v3771_v6  ;;  %v768_v62 = vpop.f32.mrb[24].mxu1  ;;  %v3336_v43 = vld [vmem:[%s4212_s5 + $0x68] sm:$0xff]  }
 0x12f   : > { %v839_v13 = vmax.f32 %v660_v1, 0.0  ;;  %1675 = vmatprep.subr.bf16.mxu0 %v3307_v56  ;;  %v3946_v60 = vpack.c.bf16 %v833_v54, %v829_v40  ;;  %v3317_v1 = vld [vmem:[%s4210_s3 + $0x2d0] ss:$12 sps:$4 sm:$0xff]   ;;  %v769_v4 = vadd.f32 %v768_v62, %v3763_v0  ;;  %v770_v7 = vpop.f32.mrb[25].mxu1  ;;  %v3345_v54 = vld [vmem:[%s4212_s5 + $0xa0] sm:$0xff]  }
 0x130   : > { %v840_v17 = vmax.f32 %v662_v9, 0.0  ;;  %v834_v57 = vmax.f32 %v765_v50, 0.0  ;;  %v771_v9 = vadd.f32 %v770_v7, %v3771_v6  ;;  %v3339_v50 = vld [vmem:[%s4212_s5 + $0x70] sm:$0xff]  }
 0x131   : > { %v875_v19 = vpack.c.bf16 %v839_v13, %v835_v12  ;;  %v837_v11 = vmax.f32 %v769_v4, 0.0 }
 0x132   : > { %v876_v22 = vpack.c.bf16 %v840_v17, %v836_v16  ;;  %1676 = vmatpush1.bf16.msra.mxu0 %v3305_v10  ;;  %v665_v2 = vpop.f32.mrb[28].mxu0  ;;  %v772_v10 = vpop.f32.mrb[26].mxu1  ;;  %v3321_v16 = vld [vmem:[%s4210_s3 + $0x2e8] ss:$12 sps:$4 sm:$0xff]  }
 0x133   : > { %v666_v30 = vadd.f32 %v665_v2, %v3727_v32  ;;  %v667_v34 = vpop.f32.mrb[29].mxu0  ;;  %1677 = vmatprep.subr.bf16.mxu0 %v3311_v14  ;;  %v773_v12 = vadd.f32 %v772_v10, %v3763_v0  ;;  %v774_v13 = vpop.f32.mrb[27].mxu1  ;;  %v838_v14 = vmax.f32 %v771_v9, 0.0 }
 0x134   : > { %v668_v38 = vadd.f32 %v667_v34, %v3731_v33  ;;  %v669_v39 = vpop.f32.mrb[30].mxu0  ;;  %1632 = vmatprep.mubr.bf16.mxu0 %v876_v22  ;;  %1846 = vmatprep.mubr.bf16.mxu1 %v876_v22  ;;  %v775_v15 = vadd.f32 %v774_v13, %v3771_v6  ;;  %v778_v2 = vpop.f32.mrb[28].mxu1 }
 0x135   : > { %v670_v45 = vadd.f32 %v669_v39, %v3727_v32  ;;  %v671_v46 = vpop.f32.mrb[31].mxu0  ;;  %1633 = vmatmul.mubr.bf16.gmra.mrb[56].mxu0 %v875_v19  ;;  %1847 = vmatmul.mubr.bf16.gmra.mrb[56].mxu1 %v875_v19  ;;  %v843_v55 = vmax.f32 %v666_v30, 0.0  ;;  %v3319_v32 = vld [vmem:[%s4210_s3 + $0x2d4] ss:$12 sps:$4 sm:$0xff]   ;;  %v841_v17 = vmax.f32 %v773_v12, 0.0  ;;  %v780_v26 = vpop.f32.mrb[29].mxu1 }
 0x136   : > { %v672_v52 = vadd.f32 %v671_v46, %v3731_v33  ;;  %1678 = vmatpush1.bf16.msra.mxu0 %v3309_v25  ;;  %v844_v58 = vmax.f32 %v668_v38, 0.0  ;;  %v3948_v33 = vpack.c.bf16 %v834_v57, %v830_v48  ;;  %v842_v19 = vmax.f32 %v775_v15, 0.0  ;;  %v782_v30 = vpop.f32.mrb[30].mxu1  ;;  %v3338_v46 = vld [vmem:[%s4212_s5 + $0x88] sm:$0xff]   ;;  %v3341_v48 = vld [vmem:[%s4212_s5 + $0x90] sm:$0xff]  }
 0x137   : > { %v847_v56 = vmax.f32 %v670_v45, 0.0  ;;  %1679 = vmatprep.subr.bf16.mxu0 %v3315_v35  ;;  %v877_v21 = vpack.c.bf16 %v841_v17, %v837_v11  ;;  %v779_v25 = vadd.f32 %v778_v2, %v3763_v0  ;;  %v781_v27 = vadd.f32 %v780_v26, %v3771_v6  ;;  %v784_v36 = vpop.f32.mrb[31].mxu1  ;;  %v3337_v45 = vld [vmem:[%s4212_s5 + $0x28] sm:$0xff]   ;;  %v3347_v57 = vld [vmem:[%s4212_s5 + $0xb0] sm:$0xff]  }
 0x138   : > { %v848_v59 = vmax.f32 %v672_v52, 0.0  ;;  %v878_v22 = vpack.c.bf16 %v842_v19, %v838_v14  ;;  %v783_v35 = vadd.f32 %v782_v30, %v3763_v0  ;;  %v785_v37 = vadd.f32 %v784_v36, %v3771_v6  ;;  %v3325_v0 = vld [vmem:[%s4212_s5 + $0x40] sm:$0xff]   ;;  %v3340_v52 = vld [vmem:[%s4212_s5 + $0x30] sm:$0xff]  }
 0x139   : > { %v879_v61 = vpack.c.bf16 %v847_v56, %v843_v55  ;;  %v845_v34 = vmax.f32 %v779_v25, 0.0  ;;  %v3326_v6 = vld [vmem:[%s4212_s5] sm:$0xff]   ;;  %v3343_v55 = vld [vmem:[%s4212_s5 + $0x78] sm:$0xff]  }
 0x13a   : > { %v880_v63 = vpack.c.bf16 %v848_v59, %v844_v58  ;;  %1680 = vmatpush1.bf16.msra.mxu0 %v3313_v53  ;;  %v849_v38 = vmax.f32 %v783_v35, 0.0  ;;  %v850_v39 = vmax.f32 %v785_v37, 0.0  ;;  %v3342_v53 = vld [vmem:[%s4212_s5 + $0x98] sm:$0xff]  }
 0x13b   : > { %1681 = vmatprep.subr.bf16.mxu0 %v3319_v32  ;;  %v3344_v56 = vld [vmem:[%s4212_s5 + $0x38] sm:$0xff]   ;;  %v3346_v32 = vld [vmem:[%s4212_s5 + $0xa8] sm:$0xff]  }
 0x13c   : > { %1642 = vmatprep.mubr.bf16.mxu0 %v880_v63  ;;  %1854 = vmatprep.mubr.bf16.mxu1 %v880_v63  ;;  %v881_v40 = vpack.c.bf16 %v849_v38, %v845_v34  ;;  %v3348_v58 = vld [vmem:[%s4212_s5 + $0xb8] sm:$0xff]  }
 0x13d   : > { %1643 = vmatmul.mubr.bf16.gmra.mrb[60].mxu0 %v879_v61  ;;  %1855 = vmatmul.mubr.bf16.gmra.mrb[60].mxu1 %v879_v61 }
 0x13e   : > { %1682 = vmatpush1.bf16.msra.mxu0 %v3317_v1  ;;  %1685 = vmatprep.mubr.bf16.mxu0 %v3807_v49 }
 0x13f   : > { %1683 = vmatprep.subr.bf16.mxu0 %v3323_v8  ;;  %1895 = vmatprep.mubr.bf16.mxu1 %v3807_v49  ;;  %v846_v49 = vmax.f32 %v781_v27, 0.0 }
 0x141   : > { %v882_v41 = vpack.c.bf16 %v850_v39, %v846_v49 }
 0x142   : > { %1684 = vmatpush1.bf16.msra.mxu0 %v3321_v16 }
 0x143   : > { %2956 = vmatprep.subr.bf16.mxu0 %v3325_v0 }
 0x145   : > { %1686 = vmatmul.mubr.bf16.vlgmr.msra.gmra.mrb[32].mxu0 %v3805_v47  ;;  %1896 = vmatmul.mubr.bf16.vlgmr.msra.gmra.mrb[64].mxu1 %v3805_v47  ;;  %v3327_v47 = vld [vmem:[%s4212_s5 + $0x48] sm:$0xff]  }
 0x146   : > { %1695 = vmatprep.mubr.bf16.mxu0 %v3843_v24  ;;  %1903 = vmatprep.mubr.bf16.mxu1 %v3843_v24  ;;  %v3329_v24 = vld [vmem:[%s4212_s5 + $0x50] sm:$0xff]  }
 0x147   : > { %2957 = vmatpush3.bf16.msra.mxu0 %v3326_v6 }
 0x148   : > { %2958 = vmatprep.subr.bf16.mxu0 %v3327_v47 }
 0x14d   : > { %1696 = vmatmul.mubr.bf16.gmra.mrb[36].mxu0 %v3841_v23  ;;  %1904 = vmatmul.mubr.bf16.gmra.mrb[68].mxu1 %v3841_v23  ;;  %v3328_v23 = vld [vmem:[%s4212_s5 + $0x8] sm:$0xff]  }
 0x14e   : > { %1705 = vmatprep.mubr.bf16.mxu0 %v3876_v5  ;;  %1911 = vmatprep.mubr.bf16.mxu1 %v3876_v5  ;;  %v3331_v5 = vld [vmem:[%s4212_s5 + $0x58] sm:$0xff]  }
 0x14f   : > { %2959 = vmatpush3.bf16.msra.mxu0 %v3328_v23 }
 0x150   : > { %2960 = vmatprep.subr.bf16.mxu0 %v3329_v24 }
 0x155   : > { %1706 = vmatmul.mubr.bf16.gmra.mrb[40].mxu0 %v3874_v3  ;;  %1912 = vmatmul.mubr.bf16.gmra.mrb[72].mxu1 %v3874_v3  ;;  %v3330_v3 = vld [vmem:[%s4212_s5 + $0x10] sm:$0xff]  }
 0x156   : > { %1715 = vmatprep.mubr.bf16.mxu0 %v3900_v44  ;;  %1919 = vmatprep.mubr.bf16.mxu1 %v3900_v44  ;;  %v3333_v44 = vld [vmem:[%s4212_s5 + $0x60] sm:$0xff]  }
 0x157   : > { %2961 = vmatpush3.bf16.msra.mxu0 %v3330_v3 }
 0x158   : > { %2962 = vmatprep.subr.bf16.mxu0 %v3331_v5 }
 0x15d   : > { %1716 = vmatmul.mubr.bf16.gmra.mrb[44].mxu0 %v3898_v42  ;;  %1920 = vmatmul.mubr.bf16.gmra.mrb[76].mxu1 %v3898_v42  ;;  %v3332_v42 = vld [vmem:[%s4212_s5 + $0x18] sm:$0xff]  }
 0x15e   : > { %1725 = vmatprep.mubr.bf16.mxu0 %v3924_v20  ;;  %1927 = vmatprep.mubr.bf16.mxu1 %v3924_v20  ;;  %v3335_v20 = vld [vmem:[%s4212_s5 + $0x80] sm:$0xff]  }
 0x15f   : > { %2963 = vmatpush3.bf16.msra.mxu0 %v3332_v42  ;;  %3036 = vmatprep.subr.bf16.mxu1 %v3335_v20 }
 0x160   : > { %2964 = vmatprep.subr.bf16.mxu0 %v3333_v44  ;;  %3037 = vmatpush3.bf16.msra.mxu1 %v3335_v20  ;;  %v1011_v20 = vld [vmem:[%s4211_s4] sm:$0x7] }
 0x161   : > { %3038 = vmatprep.subr.bf16.mxu1 %v3338_v46 }
 0x164   : > { %3039 = vmatpush3.bf16.msra.mxu1 %v3338_v46  ;;  %v4096_v46 = vrot.slane %v1011_v20, %v335_v29 }
 0x165   : > { %1726 = vmatmul.mubr.bf16.gmra.mrb[48].mxu0 %v3922_v18  ;;  %1928 = vmatmul.mubr.bf16.gmra.mrb[80].mxu1 %v3922_v18  ;;  %v3334_v18 = vld [vmem:[%s4212_s5 + $0x20] sm:$0xff]  }
 0x166   : > { %1735 = vmatprep.mubr.bf16.mxu0 %v3948_v33  ;;  %1935 = vmatprep.mubr.bf16.mxu1 %v3948_v33 }
 0x167   : > { %2965 = vmatpush3.bf16.msra.mxu0 %v3334_v18  ;;  %3040 = vmatprep.subr.bf16.mxu1 %v3341_v48 }
 0x168   : > { %2966 = vmatprep.subr.bf16.mxu0 %v3336_v43  ;;  %3041 = vmatpush3.bf16.msra.mxu1 %v3341_v48  ;;  %v4100_v48 = vrot.slane %v1011_v20, %v343_v51 }
 0x169   : > { %3042 = vmatprep.subr.bf16.mxu1 %v3342_v53 }
 0x16b   : > { %2967 = vmatpush3.bf16.msra.mxu0 %v3337_v45 }
 0x16c   : > { %2968 = vmatprep.subr.bf16.mxu0 %v3339_v50  ;;  %3043 = vmatpush3.bf16.msra.mxu1 %v3342_v53  ;;  %v4104_v50 = vrot.slane %v1011_v20, %v339_v31 }
 0x16d   : > { %1736 = vmatmul.mubr.bf16.gmra.mrb[52].mxu0 %v3946_v60  ;;  %1936 = vmatmul.mubr.bf16.gmra.mrb[84].mxu1 %v3946_v60 }
 0x16e   : > { %1745 = vmatprep.mubr.bf16.mxu0 %v878_v22  ;;  %1943 = vmatprep.mubr.bf16.mxu1 %v878_v22 }
 0x16f   : > { %2969 = vmatpush3.bf16.msra.mxu0 %v3340_v52  ;;  %3044 = vmatprep.subr.bf16.mxu1 %v3345_v54 }
 0x170   : > { %3045 = vmatpush3.bf16.msra.mxu1 %v3345_v54  ;;  %2970 = vmatprep.subr.bf16.mxu0 %v3343_v55 }
 0x171   : > { %3046 = vmatprep.subr.bf16.mxu1 %v3346_v32 }
 0x173   : > { %2971 = vmatpush3.bf16.msra.mxu0 %v3344_v56 }
 0x174   : > { %3047 = vmatpush3.bf16.msra.mxu1 %v3346_v32 }
 0x175   : > { %1746 = vmatmul.mubr.bf16.gmra.mrb[56].mxu0 %v877_v21  ;;  %1944 = vmatmul.mubr.bf16.gmra.mrb[88].mxu1 %v877_v21 }
 0x176   : > { %1755 = vmatprep.mubr.bf16.mxu0 %v882_v41  ;;  %1951 = vmatprep.mubr.bf16.mxu1 %v882_v41 }
 0x177   : > { %3048 = vmatprep.subr.bf16.mxu1 %v3347_v57 }
 0x178   : > { %3049 = vmatpush3.bf16.msra.mxu1 %v3347_v57 }
 0x179   : > { %3050 = vmatprep.subr.bf16.mxu1 %v3348_v58 }
 0x17c   : > { %3051 = vmatpush3.bf16.msra.mxu1 %v3348_v58 }
 0x17d   : > { %1756 = vmatmul.mubr.bf16.gmra.mrb[60].mxu0 %v881_v40  ;;  %1952 = vmatmul.mubr.bf16.gmra.mrb[92].mxu1 %v881_v40 }
 0x1d8   : > { %v2844_v59 = vpop.f32.mrb[32].mxu1 }
 0x1d9   : > { %v2845_v60 = vpop.f32.mrb[33].mxu1 }
 0x1da   : > { %v2846_v61 = vadd.f32 %v2845_v60, %v2844_v59  ;;  %v2847_v33 = vpop.f32.mrb[34].mxu1 }
 0x1db   : > { %v2848_v62 = vpop.f32.mrb[35].mxu1 }
 0x1dc   : > { %v2849_v63 = vadd.f32 %v2848_v62, %v2847_v33  ;;  %v1801_v32 = vadd.f32 %v2846_v61, %v4100_v48 }
 0x1de   : > { %v1804_v28 = vadd.f32 %v2849_v63, %v4100_v48 }
 0x1e0   : > { %v2850_v1 = vpop.f32.mrb[36].mxu1 }
 0x1e1   : > { %v2851_v4 = vpop.f32.mrb[37].mxu1 }
 0x1e2   : > { %v4063_v7 = vadd.f32 %v2851_v4, %v2850_v1  ;;  %v2853_v8 = vpop.f32.mrb[38].mxu1 }
 0x1e3   : > { %v2854_v9 = vpop.f32.mrb[39].mxu1 }
 0x1e4   : > { %v4065_v10 = vadd.f32 %v2854_v9, %v2853_v8  ;;  %v1809_v63 = vadd.f32 %v4063_v7, %v4100_v48 }
 0x1e8   : > { %v2856_v11 = vpop.f32.mrb[40].mxu1 }
 0x1e9   : > { %v2857_v12 = vpop.f32.mrb[41].mxu1 }
 0x1ea   : > { %v4067_v13 = vadd.f32 %v2857_v12, %v2856_v11  ;;  %v2859_v14 = vpop.f32.mrb[42].mxu1 }
 0x1eb   : > { %v2860_v15 = vpop.f32.mrb[43].mxu1 }
 0x1ec   : > { %v4069_v16 = vadd.f32 %v2860_v15, %v2859_v14 }
 0x1f0   : > { %v2862_v17 = vpop.f32.mrb[44].mxu1 }
 0x1f1   : > { %v2863_v19 = vpop.f32.mrb[45].mxu1 }
 0x1f2   : > { %v4071_v21 = vadd.f32 %v2863_v19, %v2862_v17  ;;  %v2865_v22 = vpop.f32.mrb[46].mxu1 }
 0x1f3   : > { %v2866_v2 = vpop.f32.mrb[47].mxu1 }
 0x1f4   : > { %v4073_v25 = vadd.f32 %v2866_v2, %v2865_v22 }
 0x1f8   : > { %v2868_v26 = vpop.f32.mrb[48].mxu1 }
 0x1f9   : > { %v2869_v27 = vpop.f32.mrb[49].mxu1 }
 0x1fa   : > { %v4075_v30 = vadd.f32 %v2869_v27, %v2868_v26  ;;  %v2871_v34 = vpop.f32.mrb[50].mxu1 }
 0x1fb   : > { %v2872_v35 = vpop.f32.mrb[51].mxu1 }
 0x1fc   : > { %v4077_v36 = vadd.f32 %v2872_v35, %v2871_v34 }
 0x200   : > { %v2874_v49 = vpop.f32.mrb[52].mxu1 }
 0x201   : > { %v2875_v37 = vpop.f32.mrb[53].mxu1 }
 0x202   : > { %v4079_v38 = vadd.f32 %v2875_v37, %v2874_v49  ;;  %v2877_v39 = vpop.f32.mrb[54].mxu1 }
 0x203   : > { %v2878_v40 = vpop.f32.mrb[55].mxu1 }
 0x204   : > { %v4081_v41 = vadd.f32 %v2878_v40, %v2877_v39 }
 0x208   : > { %v2880_v0 = vpop.f32.mrb[56].mxu1 }
 0x209   : > { %v2881_v6 = vpop.f32.mrb[57].mxu1 }
 0x20a   : > { %v4083_v47 = vadd.f32 %v2881_v6, %v2880_v0  ;;  %v2883_v23 = vpop.f32.mrb[58].mxu1 }
 0x20b   : > { %v2884_v24 = vpop.f32.mrb[59].mxu1 }
 0x20c   : > { %v4085_v3 = vadd.f32 %v2884_v24, %v2883_v23  ;;  %v1812_v23 = vadd.f32 %v4065_v10, %v4100_v48 }
 0x210   : > { %v2886_v5 = vpop.f32.mrb[60].mxu1 }
 0x211   : > { %v2887_v42 = vpop.f32.mrb[61].mxu1 }
 0x212   : > { %v4087_v44 = vadd.f32 %v2887_v42, %v2886_v5  ;;  %v2889_v18 = vpop.f32.mrb[62].mxu1 }
 0x213   : > { %v2890_v43 = vpop.f32.mrb[63].mxu1 }
 0x214   : > { %v4092_v45 = vadd.f32 %v2890_v43, %v2889_v18 }
 0x218   : > { %v1687_v52 = vpop.f32.mrb[32].mxu0  ;;  %v2908_v53 = vpop.f32.mrb[64].mxu1 }
 0x219   : > { %v3068_v54 = vadd.f32 %v1687_v52, %v4096_v46  ;;  %v1689_v55 = vpop.f32.mrb[33].mxu0  ;;  %v2909_v56 = vpop.f32.mrb[65].mxu1 }
 0x21a   : > { %v3069_v57 = vadd.f32 %v1689_v55, %v4104_v50  ;;  %v2910_v29 = vadd.f32 %v2909_v56, %v2908_v53  ;;  %v1691_v58 = vpop.f32.mrb[34].mxu0  ;;  %v2911_v59 = vpop.f32.mrb[66].mxu1 }
 0x21b   : > { %v3070_v51 = vadd.f32 %v1691_v58, %v4096_v46  ;;  %v1693_v60 = vpop.f32.mrb[35].mxu0  ;;  %v2912_v33 = vpop.f32.mrb[67].mxu1  ;;  %v1960_v4 = vmax.f32 %v3068_v54, 0.0 }
 0x21c   : > { %v1898_v31 = vadd.f32 %v2910_v29, %v1801_v32  ;;  %v3071_v62 = vadd.f32 %v1693_v60, %v4104_v50  ;;  %v2913_v1 = vadd.f32 %v2912_v33, %v2911_v59  ;;  %v1961_v9 = vmax.f32 %v3069_v57, 0.0 }
 0x21d   : > { %v1963_v8 = vmax.f32 %v3070_v51, 0.0  ;;  %v1817_v59 = vadd.f32 %v4067_v13, %v4100_v48 }
 0x21e   : > { %v1964_v11 = vmax.f32 %v3071_v62, 0.0  ;;  %v1901_v61 = vadd.f32 %v2913_v1, %v1804_v28  ;;  %v1962_v14 = vmax.f32 %v1898_v31, 0.0 }
 0x21f   : > { %v2008_v12 = vpack.c.bf16 %v1963_v8, %v1960_v4  ;;  %v1820_v8 = vadd.f32 %v4069_v16, %v4100_v48 }
 0x220   : > { %v2009_v15 = vpack.c.bf16 %v1964_v11, %v1961_v9  ;;  %v1965_v17 = vmax.f32 %v1901_v61, 0.0  ;;  %v1697_v19 = vpop.f32.mrb[36].mxu0  ;;  %v2914_v22 = vpop.f32.mrb[68].mxu1 }
 0x221   : > { %v3072_v2 = vadd.f32 %v1697_v19, %v4096_v46  ;;  %v1699_v26 = vpop.f32.mrb[37].mxu0  ;;  %v2915_v27 = vpop.f32.mrb[69].mxu1 }
 0x222   : > { %v3073_v34 = vadd.f32 %v1699_v26, %v4104_v50  ;;  %v2916_v35 = vadd.f32 %v2915_v27, %v2914_v22  ;;  %v1701_v49 = vpop.f32.mrb[38].mxu0  ;;  %v2917_v37 = vpop.f32.mrb[70].mxu1  ;;  %2263 = vmatprep.mubr.bf16.mxu0 %v2009_v15  ;;  %v2010_v39 = vpack.c.bf16 %v1965_v17, %v1962_v14 }
 0x223   : > { %v3074_v40 = vadd.f32 %v1701_v49, %v4096_v46  ;;  %v1703_v0 = vpop.f32.mrb[39].mxu0  ;;  %v2918_v6 = vpop.f32.mrb[71].mxu1  ;;  %2264 = vmatmul.mubr.bf16.vlgmr.msra.gmra.mrb[64].mxu0 %v2008_v12  ;;  %v1966_v7 = vmax.f32 %v3072_v2, 0.0  ;;  %v1825_v49 = vadd.f32 %v4071_v21, %v4100_v48 }
 0x224   : > { %v1906_v24 = vadd.f32 %v2916_v35, %v1809_v63  ;;  %v3075_v5 = vadd.f32 %v1703_v0, %v4104_v50  ;;  %v2919_v42 = vadd.f32 %v2918_v6, %v2917_v37  ;;  %3052 = vmatprep.mubr.bf16.mxu1 %v2010_v39  ;;  %v1967_v20 = vmax.f32 %v3073_v34, 0.0 }
 0x225   : > { %v1969_v18 = vmax.f32 %v3074_v40, 0.0 }
 0x226   : > { %v1970_v43 = vmax.f32 %v3075_v5, 0.0  ;;  %v1909_v52 = vadd.f32 %v2919_v42, %v1812_v23  ;;  %v1968_v54 = vmax.f32 %v1906_v24, 0.0  ;;  %v1828_v42 = vadd.f32 %v4073_v25, %v4100_v48 }
 0x227   : > { %v2011_v53 = vpack.c.bf16 %v1969_v18, %v1966_v7 }
 0x228   : > { %v2012_v55 = vpack.c.bf16 %v1970_v43, %v1967_v20  ;;  %v1971_v56 = vmax.f32 %v1909_v52, 0.0  ;;  %v1707_v32 = vpop.f32.mrb[40].mxu0  ;;  %v2920_v57 = vpop.f32.mrb[72].mxu1 }
 0x229   : > { %v3076_v29 = vadd.f32 %v1707_v32, %v4096_v46  ;;  %v1709_v58 = vpop.f32.mrb[41].mxu0  ;;  %v2921_v10 = vpop.f32.mrb[73].mxu1 }
 0x22a   : > { %v2013_v51 = vpack.c.bf16 %v1971_v56, %v1968_v54  ;;  %v3077_v60 = vadd.f32 %v1709_v58, %v4104_v50  ;;  %v2922_v33 = vadd.f32 %v2921_v10, %v2920_v57  ;;  %v1711_v28 = vpop.f32.mrb[42].mxu0  ;;  %v2923_v31 = vpop.f32.mrb[74].mxu1  ;;  %2271 = vmatprep.mubr.bf16.mxu0 %v2012_v55 }
 0x22b   : > { %v3078_v62 = vadd.f32 %v1711_v28, %v4096_v46  ;;  %v1713_v1 = vpop.f32.mrb[43].mxu0  ;;  %v2924_v4 = vpop.f32.mrb[75].mxu1  ;;  %2272 = vmatmul.mubr.bf16.gmra.mrb[68].mxu0 %v2011_v53  ;;  %v1972_v13 = vmax.f32 %v3076_v29, 0.0 }
 0x22c   : > { %v1914_v9 = vadd.f32 %v2922_v33, %v1817_v59  ;;  %v3079_v11 = vadd.f32 %v1713_v1, %v4104_v50  ;;  %v2925_v61 = vadd.f32 %v2924_v4, %v2923_v31  ;;  %3053 = vmatmul.mubr.bf16.vlgmr.msra.gmra.mrb[96].mxu1 %v2013_v51  ;;  %v1973_v14 = vmax.f32 %v3077_v60, 0.0 }
 0x22d   : > { %v1975_v12 = vmax.f32 %v3078_v62, 0.0  ;;  %v1833_v51 = vadd.f32 %v4075_v30, %v4100_v48 }
 0x22e   : > { %v1976_v15 = vmax.f32 %v3079_v11, 0.0  ;;  %v1917_v17 = vadd.f32 %v2925_v61, %v1820_v8  ;;  %v1974_v22 = vmax.f32 %v1914_v9, 0.0  ;;  %v1836_v9 = vadd.f32 %v4077_v36, %v4100_v48 }
 0x22f   : > { %v2014_v19 = vpack.c.bf16 %v1975_v12, %v1972_v13 }
 0x230   : > { %v2015_v2 = vpack.c.bf16 %v1976_v15, %v1973_v14  ;;  %v1977_v26 = vmax.f32 %v1917_v17, 0.0  ;;  %v1717_v27 = vpop.f32.mrb[44].mxu0  ;;  %v2926_v63 = vpop.f32.mrb[76].mxu1 }
 0x231   : > { %v3080_v34 = vadd.f32 %v1717_v27, %v4096_v46  ;;  %v1719_v35 = vpop.f32.mrb[45].mxu0  ;;  %v2927_v16 = vpop.f32.mrb[77].mxu1 }
 0x232   : > { %v3081_v37 = vadd.f32 %v1719_v35, %v4104_v50  ;;  %v2928_v39 = vadd.f32 %v2927_v16, %v2926_v63  ;;  %v1721_v40 = vpop.f32.mrb[46].mxu0  ;;  %v2929_v0 = vpop.f32.mrb[78].mxu1  ;;  %2279 = vmatprep.mubr.bf16.mxu0 %v2015_v2  ;;  %v2016_v6 = vpack.c.bf16 %v1977_v26, %v1974_v22  ;;  %v1841_v16 = vadd.f32 %v4079_v38, %v4100_v48 }
 0x233   : > { %v3082_v23 = vadd.f32 %v1721_v40, %v4096_v46  ;;  %v1723_v24 = vpop.f32.mrb[47].mxu0  ;;  %v2930_v5 = vpop.f32.mrb[79].mxu1  ;;  %2280 = vmatmul.mubr.bf16.gmra.mrb[72].mxu0 %v2014_v19  ;;  %v1978_v21 = vmax.f32 %v3080_v34, 0.0 }
 0x234   : > { %v1922_v7 = vadd.f32 %v2928_v39, %v1825_v49  ;;  %v3083_v18 = vadd.f32 %v1723_v24, %v4104_v50  ;;  %v2931_v20 = vadd.f32 %v2930_v5, %v2929_v0  ;;  %3056 = vmatprep.mubr.bf16.mxu1 %v2016_v6  ;;  %v1979_v52 = vmax.f32 %v3081_v37, 0.0 }
 0x235   : > { %v1981_v43 = vmax.f32 %v3082_v23, 0.0  ;;  %v1844_v5 = vadd.f32 %v4081_v41, %v4100_v48 }
 0x236   : > { %v1982_v53 = vmax.f32 %v3083_v18, 0.0  ;;  %v1925_v54 = vadd.f32 %v2931_v20, %v1828_v42  ;;  %v1980_v56 = vmax.f32 %v1922_v7, 0.0 }
 0x237   : > { %v2017_v55 = vpack.c.bf16 %v1981_v43, %v1978_v21 }
 0x238   : > { %v2018_v32 = vpack.c.bf16 %v1982_v53, %v1979_v52  ;;  %v1983_v57 = vmax.f32 %v1925_v54, 0.0  ;;  %v1727_v29 = vpop.f32.mrb[48].mxu0  ;;  %v2932_v58 = vpop.f32.mrb[80].mxu1 }
 0x239   : > { %v3084_v10 = vadd.f32 %v1727_v29, %v4096_v46  ;;  %v1729_v59 = vpop.f32.mrb[49].mxu0  ;;  %v2933_v25 = vpop.f32.mrb[81].mxu1 }
 0x23a   : > { %v3085_v60 = vadd.f32 %v1729_v59, %v4104_v50  ;;  %v2934_v33 = vadd.f32 %v2933_v25, %v2932_v58  ;;  %v1731_v28 = vpop.f32.mrb[50].mxu0  ;;  %v2935_v31 = vpop.f32.mrb[82].mxu1  ;;  %2287 = vmatprep.mubr.bf16.mxu0 %v2018_v32  ;;  %v2019_v62 = vpack.c.bf16 %v1983_v57, %v1980_v56 }
 0x23b   : > { %v3086_v1 = vadd.f32 %v1731_v28, %v4096_v46  ;;  %v1733_v4 = vpop.f32.mrb[51].mxu0  ;;  %v2936_v8 = vpop.f32.mrb[83].mxu1  ;;  %2288 = vmatmul.mubr.bf16.gmra.mrb[76].mxu0 %v2017_v55  ;;  %v1984_v30 = vmax.f32 %v3084_v10, 0.0  ;;  %v1849_v10 = vadd.f32 %v4083_v47, %v4100_v48 }
 0x23c   : > { %v1930_v11 = vadd.f32 %v2934_v33, %v1833_v51  ;;  %v3087_v61 = vadd.f32 %v1733_v4, %v4104_v50  ;;  %v2937_v13 = vadd.f32 %v2936_v8, %v2935_v31  ;;  %3057 = vmatmul.mubr.bf16.gmra.mrb[100].mxu1 %v2019_v62  ;;  %v1985_v14 = vmax.f32 %v3085_v60, 0.0 }
 0x23d   : > { %v1987_v12 = vmax.f32 %v3086_v1, 0.0  ;;  %v1852_v1 = vadd.f32 %v4085_v3, %v4100_v48 }
 0x23e   : > { %v1988_v15 = vmax.f32 %v3087_v61, 0.0  ;;  %v1933_v17 = vadd.f32 %v2937_v13, %v1836_v9  ;;  %v1986_v22 = vmax.f32 %v1930_v11, 0.0 }
 0x23f   : > { %v2020_v19 = vpack.c.bf16 %v1987_v12, %v1984_v30 }
 0x240   : > { %v2021_v2 = vpack.c.bf16 %v1988_v15, %v1985_v14  ;;  %v1989_v26 = vmax.f32 %v1933_v17, 0.0  ;;  %v1737_v27 = vpop.f32.mrb[52].mxu0  ;;  %v2938_v63 = vpop.f32.mrb[84].mxu1 }
 0x241   : > { %v3088_v34 = vadd.f32 %v1737_v27, %v4096_v46  ;;  %v1739_v35 = vpop.f32.mrb[53].mxu0  ;;  %v2939_v36 = vpop.f32.mrb[85].mxu1  ;;  %v1857_v27 = vadd.f32 %v4087_v44, %v4100_v48 }
 0x242   : > { %v3089_v49 = vadd.f32 %v1739_v35, %v4104_v50  ;;  %v2940_v37 = vadd.f32 %v2939_v36, %v2938_v63  ;;  %v1741_v39 = vpop.f32.mrb[54].mxu0  ;;  %v2941_v40 = vpop.f32.mrb[86].mxu1  ;;  %2295 = vmatprep.mubr.bf16.mxu0 %v2021_v2  ;;  %v2022_v0 = vpack.c.bf16 %v1989_v26, %v1986_v22 }
 0x243   : > { %v3090_v6 = vadd.f32 %v1741_v39, %v4096_v46  ;;  %v1743_v23 = vpop.f32.mrb[55].mxu0  ;;  %v2942_v24 = vpop.f32.mrb[87].mxu1  ;;  %2296 = vmatmul.mubr.bf16.gmra.mrb[80].mxu0 %v2020_v19  ;;  %v1990_v38 = vmax.f32 %v3088_v34, 0.0 }
 0x244   : > { %v1938_v42 = vadd.f32 %v2940_v37, %v1841_v16  ;;  %v3091_v7 = vadd.f32 %v1743_v23, %v4104_v50  ;;  %v2943_v18 = vadd.f32 %v2942_v24, %v2941_v40  ;;  %3060 = vmatprep.mubr.bf16.mxu1 %v2022_v0  ;;  %v1991_v21 = vmax.f32 %v3089_v49, 0.0 }
 0x245   : > { %v1993_v20 = vmax.f32 %v3090_v6, 0.0  ;;  %v1860_v40 = vadd.f32 %v4092_v45, %v4100_v48 }
 0x246   : > { %v1994_v43 = vmax.f32 %v3091_v7, 0.0  ;;  %v1941_v52 = vadd.f32 %v2943_v18, %v1844_v5  ;;  %v1992_v54 = vmax.f32 %v1938_v42, 0.0 }
 0x247   : > { %v2023_v53 = vpack.c.bf16 %v1993_v20, %v1990_v38 }
 0x248   : > { %v2024_v55 = vpack.c.bf16 %v1994_v43, %v1991_v21  ;;  %v1995_v56 = vmax.f32 %v1941_v52, 0.0  ;;  %v1747_v32 = vpop.f32.mrb[56].mxu0  ;;  %v2944_v57 = vpop.f32.mrb[88].mxu1 }
 0x249   : > { %v3092_v29 = vadd.f32 %v1747_v32, %v4096_v46  ;;  %v1749_v58 = vpop.f32.mrb[57].mxu0  ;;  %v2945_v41 = vpop.f32.mrb[89].mxu1 }
 0x24a   : > { %v3093_v59 = vadd.f32 %v1749_v58, %v4104_v50  ;;  %v2946_v25 = vadd.f32 %v2945_v41, %v2944_v57  ;;  %v1751_v51 = vpop.f32.mrb[58].mxu0  ;;  %v2947_v60 = vpop.f32.mrb[90].mxu1  ;;  %2303 = vmatprep.mubr.bf16.mxu0 %v2024_v55  ;;  %v2025_v33 = vpack.c.bf16 %v1995_v56, %v1992_v54  ;;  %v4171_v54 = vld [vmem:[%s4213_s6] ss:$0 sm:$0xff] }
 0x24b   : > { %v3094_v28 = vadd.f32 %v1751_v51, %v4096_v46  ;;  %v1753_v31 = vpop.f32.mrb[59].mxu0  ;;  %v2948_v62 = vpop.f32.mrb[91].mxu1  ;;  %2304 = vmatmul.mubr.bf16.gmra.mrb[84].mxu0 %v2023_v53  ;;  %v1996_v47 = vmax.f32 %v3092_v29, 0.0 }
 0x24c   : > { %v1946_v4 = vadd.f32 %v2946_v25, %v1849_v10  ;;  %v3095_v8 = vadd.f32 %v1753_v31, %v4104_v50  ;;  %v2949_v9 = vadd.f32 %v2948_v62, %v2947_v60  ;;  %3061 = vmatmul.mubr.bf16.gmra.mrb[104].mxu1 %v2025_v33  ;;  %v1997_v61 = vmax.f32 %v3093_v59, 0.0 }
 0x24d   : > { %v1999_v11 = vmax.f32 %v3094_v28, 0.0 }
 0x24e   : > { %v2000_v13 = vmax.f32 %v3095_v8, 0.0  ;;  %v1949_v30 = vadd.f32 %v2949_v9, %v1852_v1  ;;  %v1998_v14 = vmax.f32 %v1946_v4, 0.0 }
 0x24f   : > { %v2026_v12 = vpack.c.bf16 %v1999_v11, %v1996_v47 }
 0x250   : > { %v2027_v15 = vpack.c.bf16 %v2000_v13, %v1997_v61  ;;  %v2001_v17 = vmax.f32 %v1949_v30, 0.0  ;;  %v1757_v19 = vpop.f32.mrb[60].mxu0  ;;  %v2950_v22 = vpop.f32.mrb[92].mxu1 }
 0x251   : > { %v3096_v2 = vadd.f32 %v1757_v19, %v4096_v46  ;;  %v1759_v26 = vpop.f32.mrb[61].mxu0  ;;  %v2951_v3 = vpop.f32.mrb[93].mxu1 }
 0x252   : > { %v3097_v63 = vadd.f32 %v1759_v26, %v4104_v50  ;;  %v2952_v34 = vadd.f32 %v2951_v3, %v2950_v22  ;;  %v1761_v35 = vpop.f32.mrb[62].mxu0  ;;  %v2953_v36 = vpop.f32.mrb[94].mxu1  ;;  %2311 = vmatprep.mubr.bf16.mxu0 %v2027_v15  ;;  %v2028_v16 = vpack.c.bf16 %v2001_v17, %v1998_v14 }
 0x253   : > { %v3098_v49 = vadd.f32 %v1761_v35, %v4096_v46  ;;  %v1763_v37 = vpop.f32.mrb[63].mxu0  ;;  %v2954_v39 = vpop.f32.mrb[95].mxu1  ;;  %2312 = vmatmul.mubr.bf16.gmra.mrb[88].mxu0 %v2026_v12  ;;  %v2002_v44 = vmax.f32 %v3096_v2, 0.0 }
 0x254   : > { %v1954_v0 = vadd.f32 %v2952_v34, %v1857_v27  ;;  %v3099_v6 = vadd.f32 %v1763_v37, %v4104_v50  ;;  %v2955_v23 = vadd.f32 %v2954_v39, %v2953_v36  ;;  %3064 = vmatprep.mubr.bf16.mxu1 %v2028_v16  ;;  %v2003_v5 = vmax.f32 %v3097_v63, 0.0 }
 0x255   : > { %v2005_v24 = vmax.f32 %v3098_v49, 0.0 }
 0x256   : > { %v2006_v42 = vmax.f32 %v3099_v6, 0.0  ;;  %v1957_v7 = vadd.f32 %v2955_v23, %v1860_v40  ;;  %v2004_v38 = vmax.f32 %v1954_v0, 0.0 }
 0x257   : > { %v2029_v18 = vpack.c.bf16 %v2005_v24, %v2002_v44 }
 0x258   : > { %v2030_v20 = vpack.c.bf16 %v2006_v42, %v2003_v5  ;;  %v2007_v46 = vmax.f32 %v1957_v7, 0.0 }
 0x25a   : > { %2319 = vmatprep.mubr.bf16.mxu0 %v2030_v20  ;;  %v2031_v21 = vpack.c.bf16 %v2007_v46, %v2004_v38 }
 0x25b   : > { %2320 = vmatmul.mubr.bf16.gmra.mrb[92].mxu0 %v2029_v18 }
 0x25c   : > { %3065 = vmatmul.mubr.bf16.gmra.mrb[108].mxu1 %v2031_v21 }
 0x2f6   : > { %v2972_v43 = vpop.f32.mrb[64].mxu0 }
 0x2f7   : > { %v2973_v45 = vpop.f32.mrb[65].mxu0 }
 0x2f8   : > { %v2974_v48 = vadd.f32 %v2973_v45, %v2972_v43  ;;  %v2975_v52 = vpop.f32.mrb[66].mxu0 }
 0x2f9   : > { %v2976_v50 = vpop.f32.mrb[67].mxu0 }
 0x2fa   : > { %v2977_v53 = vadd.f32 %v2976_v50, %v2975_v52  ;;  %v2266_v57 = vadd.f32 %v2974_v48, %v4171_v54 }
 0x2fc   : > { %v2269_v51 = vadd.f32 %v2977_v53, %v4171_v54 }
 0x2fe   : > { %v2978_v55 = vpop.f32.mrb[68].mxu0 }
 0x2ff   : > { %v2979_v56 = vpop.f32.mrb[69].mxu0  ;;  %v3054_v32 = vpop.f32.mrb[96].mxu1 }
 0x300   : > { %v2980_v29 = vadd.f32 %v2979_v56, %v2978_v55  ;;  %v2981_v58 = vpop.f32.mrb[70].mxu0  ;;  %v2362_v41 = vpop.f32.mrb[97].mxu1 }
 0x301   : > { %v2363_v10 = vadd.f32 %v2362_v41, %v2266_v57  ;;  %v2982_v59 = vpop.f32.mrb[71].mxu0  ;;  %v3055_v25 = vpop.f32.mrb[98].mxu1 }
 0x302   : > { %v2274_v60 = vadd.f32 %v2980_v29, %v4171_v54  ;;  %v2983_v33 = vadd.f32 %v2982_v59, %v2981_v58  ;;  %v2365_v28 = vpop.f32.mrb[99].mxu1 }
 0x303   : > { %v2366_v31 = vadd.f32 %v2365_v28, %v2269_v51  ;;  %3349 = vtanh.f32 %v2363_v10 }
 0x304   : > { %v2371_v62 = vadd.f32 %v3054_v32, %v2274_v60  ;;  %v2277_v1 = vadd.f32 %v2983_v33, %v4171_v54 }
 0x305   : > { %3351 = vtanh.f32 %v2366_v31 }
 0x306   : > { %v2374_v4 = vadd.f32 %v3055_v25, %v2277_v1  ;;  %v2984_v8 = vpop.f32.mrb[72].mxu0  ;;  %3353 = vtanh.f32 %v2371_v62 }
 0x307   : > { %v2985_v9 = vpop.f32.mrb[73].mxu0 }
 0x308   : > { %3355 = vtanh.f32 %v2374_v4  ;;  %v2986_v47 = vadd.f32 %v2985_v9, %v2984_v8  ;;  %v2987_v11 = vpop.f32.mrb[74].mxu0 }
 0x309   : > { %v2988_v61 = vpop.f32.mrb[75].mxu0 }
 0x30a   : > { %v2989_v13 = vadd.f32 %v2988_v61, %v2987_v11  ;;  %v2282_v19 = vadd.f32 %v2986_v47, %v4171_v54 }
 0x30c   : > { %v2285_v36 = vadd.f32 %v2989_v13, %v4171_v54 }
 0x30d   : > { %v3350_v30 = vpop.eup %3349 }
 0x30e   : > { %v2990_v12 = vpop.f32.mrb[76].mxu0 }
 0x30f   : > { %v3352_v14 = vpop.eup %3351  ;;  %v2991_v15 = vpop.f32.mrb[77].mxu0 }
 0x310   : > { %v3058_v17 = vpop.f32.mrb[100].mxu1  ;;  %v2784_v22 = vpack.c.bf16 %v3352_v14, %v3350_v30  ;;  %v2992_v2 = vadd.f32 %v2991_v15, %v2990_v12  ;;  %v2993_v26 = vpop.f32.mrb[78].mxu0 }
 0x311   : > { %v2378_v3 = vpop.f32.mrb[101].mxu1  ;;  %v3354_v27 = vpop.eup %3353 }
 0x312   : > { %v2379_v63 = vadd.f32 %v2378_v3, %v2282_v19  ;;  %v2994_v34 = vpop.f32.mrb[79].mxu0  ;;  %v3059_v35 = vpop.f32.mrb[102].mxu1  ;;  %2785 = vst [vmem:[%s4182_s21] sm:$0xff] %v2784_v22   ;;  %v2290_v49 = vadd.f32 %v2992_v2, %v4171_v54 }
 0x313   : > { %v3356_v16 = vpop.eup %3355  ;;  %v2995_v37 = vadd.f32 %v2994_v34, %v2993_v26  ;;  %v2381_v39 = vpop.f32.mrb[103].mxu1 }
 0x314   : > { %v2789_v40 = vpack.c.bf16 %v3356_v16, %v3354_v27  ;;  %v2382_v0 = vadd.f32 %v2381_v39, %v2285_v36  ;;  %v2387_v6 = vadd.f32 %v3058_v17, %v2290_v49  ;;  %3357 = vtanh.f32 %v2379_v63 }
 0x315   : > { %v2293_v23 = vadd.f32 %v2995_v37, %v4171_v54 }
 0x316   : > { %2821 = vst [vmem:[%s4182_s21 + $0x8] sm:$0xff] %v2789_v40   ;;  %3359 = vtanh.f32 %v2382_v0  ;;  %v2996_v24 = vpop.f32.mrb[80].mxu0 }
 0x317   : > { %v2390_v44 = vadd.f32 %v3059_v35, %v2293_v23  ;;  %3361 = vtanh.f32 %v2387_v6  ;;  %v2997_v5 = vpop.f32.mrb[81].mxu0 }
 0x318   : > { %v2998_v42 = vadd.f32 %v2997_v5, %v2996_v24  ;;  %v2999_v7 = vpop.f32.mrb[82].mxu0 }
 0x319   : > { %3363 = vtanh.f32 %v2390_v44  ;;  %v3000_v18 = vpop.f32.mrb[83].mxu0 }
 0x31a   : > { %v3001_v38 = vadd.f32 %v3000_v18, %v2999_v7  ;;  %v2298_v48 = vadd.f32 %v2998_v42, %v4171_v54 }
 0x31c   : > { %v2301_v58 = vadd.f32 %v3001_v38, %v4171_v54 }
 0x31e   : > { %v3358_v20 = vpop.eup %3357  ;;  %v3002_v46 = vpop.f32.mrb[84].mxu0 }
 0x31f   : > { %v3003_v43 = vpop.f32.mrb[85].mxu0  ;;  %v3062_v45 = vpop.f32.mrb[104].mxu1 }
 0x320   : > { %v3360_v21 = vpop.eup %3359  ;;  %v3004_v50 = vadd.f32 %v3003_v43, %v3002_v46  ;;  %v3005_v53 = vpop.f32.mrb[86].mxu0 }
 0x321   : > { %v2794_v52 = vpack.c.bf16 %v3360_v21, %v3358_v20  ;;  %v2394_v55 = vpop.f32.mrb[105].mxu1  ;;  %v3362_v56 = vpop.eup %3361 }
 0x322   : > { %v2395_v32 = vadd.f32 %v2394_v55, %v2298_v48  ;;  %v3006_v57 = vpop.f32.mrb[87].mxu0  ;;  %v3063_v29 = vpop.f32.mrb[106].mxu1  ;;  %v2306_v10 = vadd.f32 %v3004_v50, %v4171_v54 }
 0x323   : > { %v3364_v41 = vpop.eup %3363  ;;  %2822 = vst [vmem:[%s4182_s21 + $0x10] sm:$0xff] %v2794_v52   ;;  %v3007_v59 = vadd.f32 %v3006_v57, %v3005_v53  ;;  %v2397_v25 = vpop.f32.mrb[107].mxu1 }
 0x324   : > { %v2799_v51 = vpack.c.bf16 %v3364_v41, %v3362_v56  ;;  %v2398_v60 = vadd.f32 %v2397_v25, %v2301_v58  ;;  %v2403_v33 = vadd.f32 %v3062_v45, %v2306_v10  ;;  %3365 = vtanh.f32 %v2395_v32 }
 0x325   : > { %v2309_v28 = vadd.f32 %v3007_v59, %v4171_v54 }
 0x326   : > { %2823 = vst [vmem:[%s4182_s21 + $0x18] sm:$0xff] %v2799_v51   ;;  %3367 = vtanh.f32 %v2398_v60  ;;  %v3008_v62 = vpop.f32.mrb[88].mxu0 }
 0x327   : > { %v2406_v31 = vadd.f32 %v3063_v29, %v2309_v28  ;;  %3369 = vtanh.f32 %v2403_v33  ;;  %v3009_v1 = vpop.f32.mrb[89].mxu0 }
 0x328   : > { %v3010_v4 = vadd.f32 %v3009_v1, %v3008_v62  ;;  %v3011_v8 = vpop.f32.mrb[90].mxu0 }
 0x329   : > { %3371 = vtanh.f32 %v2406_v31  ;;  %v3012_v9 = vpop.f32.mrb[91].mxu0 }
 0x32a   : > { %v3013_v47 = vadd.f32 %v3012_v9, %v3011_v8  ;;  %v2314_v14 = vadd.f32 %v3010_v4, %v4171_v54 }
 0x32c   : > { %v2317_v63 = vadd.f32 %v3013_v47, %v4171_v54 }
 0x32e   : > { %v3366_v11 = vpop.eup %3365  ;;  %v3014_v61 = vpop.f32.mrb[92].mxu0 }
 0x32f   : > { %v3015_v30 = vpop.f32.mrb[93].mxu0  ;;  %v3066_v12 = vpop.f32.mrb[108].mxu1 }
 0x330   : > { %v3368_v13 = vpop.eup %3367  ;;  %v3016_v17 = vadd.f32 %v3015_v30, %v3014_v61  ;;  %v3017_v19 = vpop.f32.mrb[94].mxu0 }
 0x331   : > { %v2804_v15 = vpack.c.bf16 %v3368_v13, %v3366_v11  ;;  %v2410_v22 = vpop.f32.mrb[109].mxu1  ;;  %v3370_v2 = vpop.eup %3369 }
 0x332   : > { %v2411_v26 = vadd.f32 %v2410_v22, %v2314_v14  ;;  %v3018_v3 = vpop.f32.mrb[95].mxu0  ;;  %v3067_v27 = vpop.f32.mrb[110].mxu1  ;;  %v2322_v35 = vadd.f32 %v3016_v17, %v4171_v54 }
 0x333   : > { %v3372_v34 = vpop.eup %3371  ;;  %2824 = vst [vmem:[%s4182_s21 + $0x20] sm:$0xff] %v2804_v15   ;;  %v3019_v36 = vadd.f32 %v3018_v3, %v3017_v19  ;;  %v2413_v16 = vpop.f32.mrb[111].mxu1 }
 0x334   : > { %v2809_v49 = vpack.c.bf16 %v3372_v34, %v3370_v2  ;;  %v2414_v37 = vadd.f32 %v2413_v16, %v2317_v63  ;;  %v2419_v39 = vadd.f32 %v3066_v12, %v2322_v35  ;;  %3373 = vtanh.f32 %v2411_v26 }
 0x335   : > { %v2325_v40 = vadd.f32 %v3019_v36, %v4171_v54 }
 0x336   : > { %2825 = vst [vmem:[%s4182_s21 + $0x28] sm:$0xff] %v2809_v49   ;;  %3375 = vtanh.f32 %v2414_v37 }
 0x337   : > { %v2422_v0 = vadd.f32 %v3067_v27, %v2325_v40  ;;  %3377 = vtanh.f32 %v2419_v39 }
 0x339   : > { %3379 = vtanh.f32 %v2422_v0 }
 0x33e   : > { %v3374_v6 = vpop.eup %3373 }
 0x340   : > { %v3376_v23 = vpop.eup %3375 }
 0x341   : > { %v2814_v44 = vpack.c.bf16 %v3376_v23, %v3374_v6  ;;  %v3378_v24 = vpop.eup %3377 }
 0x343   : > { %v3380_v5 = vpop.eup %3379  ;;  %2826 = vst [vmem:[%s4182_s21 + $0x30] sm:$0xff] %v2814_v44  }
 0x344   : > { %v2819_v42 = vpack.c.bf16 %v3380_v5, %v3378_v24 }
 0x346   : > { %2827 = vst [vmem:[%s4182_s21 + $0x38] sm:$0xff] %v2819_v42  }
 0x347 PF: > { %s17_s24 = sadd.s32 1, %s3387_s24  }
 0x348   : > { %p14_p4 = scmp.ge.s32.totalorder %s17_s24, 4  }
 0x34a   :  { %16 = sbr.rel (!%p14_p4) target bundleno = 1 (0x1), region = 78 }

</bundles_post_ra>
